<compile_context>
chip_gen: v7x
topology: tpu7x:2x2x1
jax: 0.10.0
libtpu: 0.0.40
codegen_flags: <defaults>
</compile_context>

<pallas_src>
import functools

import jax
import jax.numpy as jnp
from jax.experimental import pallas as pl
from jax.experimental.pallas import tpu as pltpu

# ---- model hyper-parameters (small, deterministic synthetic config) --------
D_MODEL = 32
N_HEADS = 4
HEAD_DIM = D_MODEL // N_HEADS
D_FFN = 64
N_LAYERS = 2
LN_EPS = 1e-5


def _layernorm(x, gamma, beta):
    # f32 math throughout (EUP rsqrt); gamma/beta broadcast over rows.
    mean = jnp.mean(x, axis=-1, keepdims=True)
    var = jnp.mean((x - mean) ** 2, axis=-1, keepdims=True)
    return (x - mean) * jax.lax.rsqrt(var + LN_EPS) * gamma + beta


# ---------------------------------------------------------------------------
# Pallas kernel: one encoder layer per grid step, activation carried in o_ref
# ---------------------------------------------------------------------------
def encoder_layer_kernel(
    x_ref,                                   # (S, D)   f32   (batch block)
    wqkv_ref, bqkv_ref,                      # (D, 3D) bf16 / (1, 3D) f32
    wo_ref, bo_ref,                          # (D, D)  bf16 / (1, D)  f32
    ln1_g_ref, ln1_b_ref,                    # (1, D) f32
    w1_ref, b1_ref,                          # (D, F) bf16 / (1, F) f32
    w2_ref, b2_ref,                          # (F, D) bf16 / (1, D) f32
    ln2_g_ref, ln2_b_ref,                    # (1, D) f32
    lnf_g_ref, lnf_b_ref,                    # (1, D) f32 (final norm)
    o_ref,                                   # (S, D)   f32   (carried activation)
    *,
    num_heads, apply_final_norm,
):
    layer = pl.program_id(1)
    n_layers = pl.num_programs(1)
    seq, d_model = x_ref.shape
    head_dim = d_model // num_heads
    scale = 1.0 / (head_dim ** 0.5)

    # Seed the carried activation from the input on the first layer step.
    @pl.when(layer == 0)
    def _():
        o_ref[...] = x_ref[...]

    x = o_ref[...].astype(jnp.float32)                               # (S, D)

    # ---- fused QKV projection: one (S, D) x (D, 3D) MXU matmul ----
    qkv = (jnp.dot(x.astype(jnp.bfloat16), wqkv_ref[...],
                   preferred_element_type=jnp.float32)
           + bqkv_ref[...])                                          # (S, 3D) f32
    qkv = qkv.astype(jnp.bfloat16)                                   # cast once

    q = qkv[:, 0 * d_model:1 * d_model].reshape(seq, num_heads, head_dim)
    k = qkv[:, 1 * d_model:2 * d_model].reshape(seq, num_heads, head_dim)
    v = qkv[:, 2 * d_model:3 * d_model].reshape(seq, num_heads, head_dim)

    # ---- all heads at once: one scores einsum, softmax, one context einsum ----
    s = jnp.einsum('qhd,khd->hqk', q, k,
                   preferred_element_type=jnp.float32) * scale       # (H, S, S)
    s = s - jnp.max(s, axis=-1, keepdims=True)
    p = jnp.exp(s)                                                    # f32 (EUP)
    p = p * pl.reciprocal(jnp.sum(p, axis=-1, keepdims=True), approx=True)
    ctx = jnp.einsum('hqk,khd->qhd', p.astype(jnp.bfloat16), v,
                     preferred_element_type=jnp.float32)              # (S, H, hd)

    # ---- single output projection over all heads ----
    attn = (jnp.dot(ctx.reshape(seq, d_model).astype(jnp.bfloat16), wo_ref[...],
                    preferred_element_type=jnp.float32)
            + bo_ref[...])

    # residual + LayerNorm 1 (dropout = 0 in eval)
    x1 = _layernorm(x + attn, ln1_g_ref[...], ln1_b_ref[...])

    # ---- position-wise feed-forward (ReLU) ----
    h1 = jnp.maximum(
        jnp.dot(x1.astype(jnp.bfloat16), w1_ref[...],
                preferred_element_type=jnp.float32) + b1_ref[...],
        0.0)
    ff = jnp.dot(h1.astype(jnp.bfloat16), w2_ref[...],
                 preferred_element_type=jnp.float32) + b2_ref[...]

    # residual + LayerNorm 2 -> carried activation
    x2 = _layernorm(x1 + ff, ln2_g_ref[...], ln2_b_ref[...])
    o_ref[...] = x2.astype(o_ref.dtype)

    if apply_final_norm:
        @pl.when(layer == n_layers - 1)
        def _():
            o_ref[...] = _layernorm(x2, lnf_g_ref[...],
                                    lnf_b_ref[...]).astype(o_ref.dtype)


# ---------------------------------------------------------------------------
# Wrapper
# ---------------------------------------------------------------------------
def _stack_layer_params(layer_params):
    """Stack per-layer params along a leading (L, ...) axis.

    Matmul weights are cast to bf16 (MXU inputs, half the weight DMA); biases
    and LayerNorm params stay f32.
    """
    def stk(name, dtype=None):
        arr = jnp.stack([p[name] for p in layer_params], axis=0)
        return arr.astype(dtype) if dtype is not None else arr

    return dict(
        wqkv=stk("wqkv", jnp.bfloat16), bqkv=stk("bqkv"),
        wo=stk("wo", jnp.bfloat16), bo=stk("bo"),
        ln1_g=stk("ln1_g"), ln1_b=stk("ln1_b"),
        w1=stk("w1", jnp.bfloat16), b1=stk("b1"),
        w2=stk("w2", jnp.bfloat16), b2=stk("b2"),
        ln2_g=stk("ln2_g"), ln2_b=stk("ln2_b"),
    )


def transformer_encoder(x, layer_params, final_norm_params=None):
    """Equivalent of TransformerEncoder.forward (eval mode, post-norm layers)."""
    B, S, D = x.shape
    F = layer_params[0]["w1"].shape[-1]
    L = len(layer_params)
    sp = _stack_layer_params(layer_params)

    if final_norm_params is not None:
        lnf_g, lnf_b = final_norm_params
        apply_final = True
    else:
        lnf_g = jnp.ones((1, D), jnp.float32)
        lnf_b = jnp.zeros((1, D), jnp.float32)
        apply_final = False

    kernel = functools.partial(
        encoder_layer_kernel, num_heads=N_HEADS, apply_final_norm=apply_final)

    def wspec(shape):
        # per-layer weight block: streamed along the (arbitrary) layer axis
        return pl.BlockSpec((None,) + shape, lambda b, l: (l, 0, 0))

    grid_spec = pltpu.PrefetchScalarGridSpec(
        num_scalar_prefetch=0,
        grid=(B, L),                      # (parallel batch, arbitrary layers)
        in_specs=[
            pl.BlockSpec((None, S, D), lambda b, l: (b, 0, 0)),     # x
            wspec((D, 3 * D)), wspec((1, 3 * D)),                   # wqkv, bqkv
            wspec((D, D)), wspec((1, D)),                           # wo, bo
            wspec((1, D)), wspec((1, D)),                           # ln1 g/b
            wspec((D, F)), wspec((1, F)),                           # w1, b1
            wspec((F, D)), wspec((1, D)),                           # w2, b2
            wspec((1, D)), wspec((1, D)),                           # ln2 g/b
            pl.BlockSpec((1, D), lambda b, l: (0, 0)),              # lnf gamma
            pl.BlockSpec((1, D), lambda b, l: (0, 0)),              # lnf beta
        ],
        # Output block index ignores the layer axis -> activation stays
        # resident in VMEM across all layers (HBM writeback only at the end).
        out_specs=pl.BlockSpec((None, S, D), lambda b, l: (b, 0, 0)),
    )

    out = pl.pallas_call(
        kernel,
        out_shape=jax.ShapeDtypeStruct((B, S, D), x.dtype),
        grid_spec=grid_spec,
        compiler_params=pltpu.CompilerParams(
            dimension_semantics=("parallel", "arbitrary"),
            # explicit scoped-VMEM cap with headroom (under v7x's 64 MiB)
            vmem_limit_bytes=48 * 1024 * 1024,
        ),
    )(x,
      sp["wqkv"], sp["bqkv"], sp["wo"], sp["bo"],
      sp["ln1_g"], sp["ln1_b"],
      sp["w1"], sp["b1"], sp["w2"], sp["b2"],
      sp["ln2_g"], sp["ln2_b"],
      lnf_g, lnf_b)
    return out


# ---------------------------------------------------------------------------
# Pure-JAX f32 reference (for a relaxed-tolerance correctness check)
# ---------------------------------------------------------------------------
def reference_forward(x, layer_params, final_norm_params=None):
    B, S, D = x.shape
    hd = D // N_HEADS
    out = x
    for p in layer_params:
        qkv = jnp.einsum('bsd,de->bse', out, p["wqkv"]) + p["bqkv"]
        q = qkv[..., 0 * D:1 * D].reshape(B, S, N_HEADS, hd)
        k = qkv[..., 1 * D:2 * D].reshape(B, S, N_HEADS, hd)
        v = qkv[..., 2 * D:3 * D].reshape(B, S, N_HEADS, hd)
        s = jnp.einsum('bqhd,bkhd->bhqk', q, k) / (hd ** 0.5)
        a = jax.nn.softmax(s, axis=-1)
        ctx = jnp.einsum('bhqk,bkhd->bqhd', a, v).reshape(B, S, D)
        attn = jnp.einsum('bsd,de->bse', ctx, p["wo"]) + p["bo"]
        x1 = _layernorm(out + attn, p["ln1_g"], p["ln1_b"])
        h1 = jnp.maximum(jnp.einsum('bsd,df->bsf', x1, p["w1"]) + p["b1"], 0.0)
        ff = jnp.einsum('bsf,fd->bsd', h1, p["w2"]) + p["b2"]
        out = _layernorm(x1 + ff, p["ln2_g"], p["ln2_b"])
    if final_norm_params is not None:
        g, b = final_norm_params
        out = _layernorm(out, g, b)
    return out


# ---------------------------------------------------------------------------
# Deterministic parameter construction (synthetic init, no checkpoint)
# ---------------------------------------------------------------------------
def init_layer_params(key):
    ks = jax.random.split(key, 4)
    s = 0.05
    return {
        # fused QKV projection weight/bias (computes x @ W; see header note on
        # the PyTorch x @ W.T / in_proj_weight convention)
        "wqkv": s * jax.random.normal(ks[0], (D_MODEL, 3 * D_MODEL), jnp.float32),
        "bqkv": jnp.zeros((1, 3 * D_MODEL), jnp.float32),
        "wo": s * jax.random.normal(ks[1], (D_MODEL, D_MODEL), jnp.float32),
        "bo": jnp.zeros((1, D_MODEL), jnp.float32),
        "ln1_g": jnp.ones((1, D_MODEL), jnp.float32),
        "ln1_b": jnp.zeros((1, D_MODEL), jnp.float32),
        "w1": s * jax.random.normal(ks[2], (D_MODEL, D_FFN), jnp.float32),
        "b1": jnp.zeros((1, D_FFN), jnp.float32),
        "w2": s * jax.random.normal(ks[3], (D_FFN, D_MODEL), jnp.float32),
        "b2": jnp.zeros((1, D_MODEL), jnp.float32),
        "ln2_g": jnp.ones((1, D_MODEL), jnp.float32),
        "ln2_b": jnp.zeros((1, D_MODEL), jnp.float32),
    }


if __name__ == "__main__":
    key = jax.random.PRNGKey(0)
    k_x, k_layers = jax.random.split(key)

    B, S = 2, 8
    x = jax.random.normal(k_x, (B, S, D_MODEL), jnp.float32)

    layer_keys = jax.random.split(k_layers, N_LAYERS)
    layer_params = [init_layer_params(k) for k in layer_keys]

    # optional final norm_layer = LayerNorm(D_MODEL)
    final_norm = (jnp.ones((1, D_MODEL), jnp.float32),
                  jnp.zeros((1, D_MODEL), jnp.float32))

    fwd = jax.jit(lambda xx: transformer_encoder(xx, layer_params, final_norm))
    out = jax.block_until_ready(fwd(x))

    # relaxed-tolerance check vs. a pure f32 reference (bf16 MXU inputs +
    # approx reciprocal in softmax mean results are not bitwise identical)
    ref = reference_forward(x, layer_params, final_norm)
    err = float(jnp.max(jnp.abs(out - ref)))

    assert out.shape == (B, S, D_MODEL)
    assert bool(jnp.all(jnp.isfinite(out)))
    assert err < 5e-2, f"max abs err vs f32 reference = {err}"
    print("KERNEL_OK")
</pallas_src>

<mosaic_0001>
module attributes {stable_mosaic.version = 11 : i64} {
  func.func @encoder_layer_kernel(%arg0: i32, %arg1: i32, %arg2: memref<1x8x32xf32, #tpu.memory_space<vmem>>, %arg3: memref<1x32x96xbf16, #tpu.memory_space<vmem>>, %arg4: memref<1x1x96xf32, #tpu.memory_space<vmem>>, %arg5: memref<1x32x32xbf16, #tpu.memory_space<vmem>>, %arg6: memref<1x1x32xf32, #tpu.memory_space<vmem>>, %arg7: memref<1x1x32xf32, #tpu.memory_space<vmem>>, %arg8: memref<1x1x32xf32, #tpu.memory_space<vmem>>, %arg9: memref<1x32x64xbf16, #tpu.memory_space<vmem>>, %arg10: memref<1x1x64xf32, #tpu.memory_space<vmem>>, %arg11: memref<1x64x32xbf16, #tpu.memory_space<vmem>>, %arg12: memref<1x1x32xf32, #tpu.memory_space<vmem>>, %arg13: memref<1x1x32xf32, #tpu.memory_space<vmem>>, %arg14: memref<1x1x32xf32, #tpu.memory_space<vmem>>, %arg15: memref<1x32xf32, #tpu.memory_space<vmem>>, %arg16: memref<1x32xf32, #tpu.memory_space<vmem>>, %arg17: memref<1x8x32xf32, #tpu.memory_space<vmem>>) attributes {dimension_semantics = [#tpu.dimension_semantics<parallel>, #tpu.dimension_semantics<arbitrary>], iteration_bounds = array<i64: 2, 2>, scalar_prefetch = 0 : i64, scratch_operands = 0 : i64, tpu.core_type = #tpu.core_type<tc>, window_params = [{transform_indices = @transform_0, window_bounds = array<i64: 1, 8, 32>}, {transform_indices = @transform_1, window_bounds = array<i64: 1, 32, 96>}, {transform_indices = @transform_2, window_bounds = array<i64: 1, 1, 96>}, {transform_indices = @transform_3, window_bounds = array<i64: 1, 32, 32>}, {transform_indices = @transform_4, window_bounds = array<i64: 1, 1, 32>}, {transform_indices = @transform_5, window_bounds = array<i64: 1, 1, 32>}, {transform_indices = @transform_6, window_bounds = array<i64: 1, 1, 32>}, {transform_indices = @transform_7, window_bounds = array<i64: 1, 32, 64>}, {transform_indices = @transform_8, window_bounds = array<i64: 1, 1, 64>}, {transform_indices = @transform_9, window_bounds = array<i64: 1, 64, 32>}, {transform_indices = @transform_10, window_bounds = array<i64: 1, 1, 32>}, {transform_indices = @transform_11, window_bounds = array<i64: 1, 1, 32>}, {transform_indices = @transform_12, window_bounds = array<i64: 1, 1, 32>}, {pipeline_mode = #tpu.pipeline_mode<synchronous>, transform_indices = @transform_13, window_bounds = array<i64: 1, 32>}, {pipeline_mode = #tpu.pipeline_mode<synchronous>, transform_indices = @transform_14, window_bounds = array<i64: 1, 32>}, {transform_indices = @transform_15, window_bounds = array<i64: 1, 8, 32>}]} {
    %c0_i32 = arith.constant 0 : i32
    %0 = arith.cmpi eq, %arg1, %c0_i32 : i32
    %1 = arith.extui %0 : i1 to i32
    %c0_i32_0 = arith.constant 0 : i32
    %2 = arith.cmpi ne, %1, %c0_i32_0 : i32
    scf.if %2 {
      %c0_62 = arith.constant 0 : index
      %c0_63 = arith.constant 0 : index
      %c0_64 = arith.constant 0 : index
      %123 = vector.load %arg2[%c0_62, %c0_63, %c0_64] : memref<1x8x32xf32, #tpu.memory_space<vmem>>, vector<1x8x32xf32>
      %124 = vector.shape_cast %123 : vector<1x8x32xf32> to vector<8x32xf32>
      %c0_65 = arith.constant 0 : index
      %c0_66 = arith.constant 0 : index
      %c0_67 = arith.constant 0 : index
      %125 = vector.load %arg17[%c0_65, %c0_66, %c0_67] : memref<1x8x32xf32, #tpu.memory_space<vmem>>, vector<1x8x32xf32>
      %126 = vector.shape_cast %125 : vector<1x8x32xf32> to vector<8x32xf32>
      %127 = vector.shape_cast %124 : vector<8x32xf32> to vector<1x8x32xf32>
      tpu.vector_store %arg17[%c0_65, %c0_66, %c0_67], %127 {strides = array<i32>} : memref<1x8x32xf32, #tpu.memory_space<vmem>>, vector<1x8x32xf32>,
    } else {
    }
    %c0 = arith.constant 0 : index
    %c0_1 = arith.constant 0 : index
    %c0_2 = arith.constant 0 : index
    %3 = vector.load %arg17[%c0, %c0_1, %c0_2] : memref<1x8x32xf32, #tpu.memory_space<vmem>>, vector<1x8x32xf32>
    %4 = vector.shape_cast %3 : vector<1x8x32xf32> to vector<8x32xf32>
    %5 = arith.truncf %4 : vector<8x32xf32> to vector<8x32xbf16>
    %c0_3 = arith.constant 0 : index
    %c0_4 = arith.constant 0 : index
    %c0_5 = arith.constant 0 : index
    %6 = vector.load %arg3[%c0_3, %c0_4, %c0_5] : memref<1x32x96xbf16, #tpu.memory_space<vmem>>, vector<1x32x96xbf16>
    %7 = vector.shape_cast %6 : vector<1x32x96xbf16> to vector<32x96xbf16>
    %cst = arith.constant dense<0.000000e+00> : vector<8x96xf32>
    %8 = tpu.matmul %5, %7, %cst {dimension_numbers = #tpu.dot_dimension_numbers<[1], [0], [0], [1], [0, 0, 1, 1], [], []>} : vector<8x32xbf16>, vector<32x96xbf16>, vector<8x96xf32> -> vector<8x96xf32>
    %c0_6 = arith.constant 0 : index
    %c0_7 = arith.constant 0 : index
    %c0_8 = arith.constant 0 : index
    %9 = vector.load %arg4[%c0_6, %c0_7, %c0_8] : memref<1x1x96xf32, #tpu.memory_space<vmem>>, vector<1x1x96xf32>
    %10 = vector.shape_cast %9 : vector<1x1x96xf32> to vector<1x96xf32>
    %11 = vector.broadcast %10 : vector<1x96xf32> to vector<8x96xf32>
    %12 = arith.addf %8, %11 : vector<8x96xf32>
    %13 = arith.truncf %12 : vector<8x96xf32> to vector<8x96xbf16>
    %14 = vector.extract_strided_slice %13 {offsets = [0, 0], sizes = [8, 32], strides = [1, 1]} : vector<8x96xbf16> to vector<8x32xbf16>
    %15 = vector.shape_cast %14 : vector<8x32xbf16> to vector<8x4x8xbf16>
    %16 = vector.extract_strided_slice %13 {offsets = [0, 32], sizes = [8, 32], strides = [1, 1]} : vector<8x96xbf16> to vector<8x32xbf16>
    %17 = vector.shape_cast %16 : vector<8x32xbf16> to vector<8x4x8xbf16>
    %18 = vector.extract_strided_slice %13 {offsets = [0, 64], sizes = [8, 32], strides = [1, 1]} : vector<8x96xbf16> to vector<8x32xbf16>
    %19 = vector.shape_cast %18 : vector<8x32xbf16> to vector<8x4x8xbf16>
    "tpu.trace_start"() <{level = 10 : i32, message = "qhd,khd->hqk"}> : () -> ()
    %cst_9 = arith.constant dense<0.000000e+00> : vector<4x8x8xf32>
    %20 = tpu.matmul %15, %17, %cst_9 {dimension_numbers = #tpu.dot_dimension_numbers<[2], [2], [0], [0], [0, 1, 0, 0, 1, 0], [1], [1]>} : vector<8x4x8xbf16>, vector<8x4x8xbf16>, vector<4x8x8xf32> -> vector<4x8x8xf32>
    "tpu.trace_stop"() : () -> ()
    %cst_10 = arith.constant 0.353553385 : f32
    %21 = vector.broadcast %cst_10 : f32 to vector<4x8x8xf32>
    %22 = arith.mulf %20, %21 : vector<4x8x8xf32>
    %cst_11 = arith.constant dense<0xFF800000> : vector<4x8xf32>
    %23 = vector.multi_reduction <maximumf>, %22, %cst_11 [2] : vector<4x8x8xf32> to vector<4x8xf32>
    %24 = vector.shape_cast %23 : vector<4x8xf32> to vector<4x8x1xf32>
    %25 = vector.broadcast %24 : vector<4x8x1xf32> to vector<4x8x8xf32>
    %26 = arith.subf %22, %25 : vector<4x8x8xf32>
    %27 = math.exp %26 : vector<4x8x8xf32>
    %cst_12 = arith.constant dense<0.000000e+00> : vector<4x8xf32>
    %28 = vector.multi_reduction <add>, %27, %cst_12 [2] : vector<4x8x8xf32> to vector<4x8xf32>
    %29 = vector.shape_cast %28 : vector<4x8xf32> to vector<4x8x1xf32>
    %30 = tpu.reciprocal %29 {approx = true} : vector<4x8x1xf32> -> vector<4x8x1xf32>
    %31 = vector.broadcast %30 : vector<4x8x1xf32> to vector<4x8x8xf32>
    %32 = arith.mulf %27, %31 : vector<4x8x8xf32>
    %33 = arith.truncf %32 : vector<4x8x8xf32> to vector<4x8x8xbf16>
    "tpu.trace_start"() <{level = 10 : i32, message = "hqk,khd->qhd"}> : () -> ()
    %cst_13 = arith.constant dense<0.000000e+00> : vector<4x8x8xf32>
    %34 = tpu.matmul %19, %33, %cst_13 {dimension_numbers = #tpu.dot_dimension_numbers<[0], [2], [2], [1], [0, 1, 0, 2, 1, 1], [1], [0]>} : vector<8x4x8xbf16>, vector<4x8x8xbf16>, vector<4x8x8xf32> -> vector<4x8x8xf32>
    %35 = tpu.transpose %34, [2, 0, 1] : vector<4x8x8xf32> -> vector<8x4x8xf32>
    "tpu.trace_stop"() : () -> ()
    %36 = vector.shape_cast %35 : vector<8x4x8xf32> to vector<8x32xf32>
    %37 = arith.truncf %36 : vector<8x32xf32> to vector<8x32xbf16>
    %c0_14 = arith.constant 0 : index
    %c0_15 = arith.constant 0 : index
    %c0_16 = arith.constant 0 : index
    %38 = vector.load %arg5[%c0_14, %c0_15, %c0_16] : memref<1x32x32xbf16, #tpu.memory_space<vmem>>, vector<1x32x32xbf16>
    %39 = vector.shape_cast %38 : vector<1x32x32xbf16> to vector<32x32xbf16>
    %cst_17 = arith.constant dense<0.000000e+00> : vector<8x32xf32>
    %40 = tpu.matmul %37, %39, %cst_17 {dimension_numbers = #tpu.dot_dimension_numbers<[1], [0], [0], [1], [0, 0, 1, 1], [], []>} : vector<8x32xbf16>, vector<32x32xbf16>, vector<8x32xf32> -> vector<8x32xf32>
    %c0_18 = arith.constant 0 : index
    %c0_19 = arith.constant 0 : index
    %c0_20 = arith.constant 0 : index
    %41 = vector.load %arg6[%c0_18, %c0_19, %c0_20] : memref<1x1x32xf32, #tpu.memory_space<vmem>>, vector<1x1x32xf32>
    %42 = vector.shape_cast %41 : vector<1x1x32xf32> to vector<1x32xf32>
    %43 = vector.broadcast %42 : vector<1x32xf32> to vector<8x32xf32>
    %44 = arith.addf %40, %43 : vector<8x32xf32>
    %45 = arith.addf %4, %44 : vector<8x32xf32>
    %c0_21 = arith.constant 0 : index
    %c0_22 = arith.constant 0 : index
    %c0_23 = arith.constant 0 : index
    %46 = vector.load %arg7[%c0_21, %c0_22, %c0_23] : memref<1x1x32xf32, #tpu.memory_space<vmem>>, vector<1x1x32xf32>
    %47 = vector.shape_cast %46 : vector<1x1x32xf32> to vector<1x32xf32>
    %c0_24 = arith.constant 0 : index
    %c0_25 = arith.constant 0 : index
    %c0_26 = arith.constant 0 : index
    %48 = vector.load %arg8[%c0_24, %c0_25, %c0_26] : memref<1x1x32xf32, #tpu.memory_space<vmem>>, vector<1x1x32xf32>
    %49 = vector.shape_cast %48 : vector<1x1x32xf32> to vector<1x32xf32>
    %cst_27 = arith.constant dense<0.000000e+00> : vector<8xf32>
    %50 = vector.multi_reduction <add>, %45, %cst_27 [1] : vector<8x32xf32> to vector<8xf32>
    %51 = vector.shape_cast %50 : vector<8xf32> to vector<8x1xf32>
    %cst_28 = arith.constant 3.200000e+01 : f32
    %52 = vector.broadcast %cst_28 : f32 to vector<8x1xf32>
    %53 = arith.divf %51, %52 : vector<8x1xf32>
    %54 = vector.broadcast %53 : vector<8x1xf32> to vector<8x32xf32>
    %55 = arith.subf %45, %54 : vector<8x32xf32>
    %56 = arith.mulf %55, %55 : vector<8x32xf32>
    %cst_29 = arith.constant dense<0.000000e+00> : vector<8xf32>
    %57 = vector.multi_reduction <add>, %56, %cst_29 [1] : vector<8x32xf32> to vector<8xf32>
    %58 = vector.shape_cast %57 : vector<8xf32> to vector<8x1xf32>
    %cst_30 = arith.constant 3.200000e+01 : f32
    %59 = vector.broadcast %cst_30 : f32 to vector<8x1xf32>
    %60 = arith.divf %58, %59 : vector<8x1xf32>
    %61 = vector.broadcast %53 : vector<8x1xf32> to vector<8x32xf32>
    %62 = arith.subf %45, %61 : vector<8x32xf32>
    %cst_31 = arith.constant 9.99999974E-6 : f32
    %63 = vector.broadcast %cst_31 : f32 to vector<8x1xf32>
    %64 = arith.addf %60, %63 : vector<8x1xf32>
    %65 = math.rsqrt %64 : vector<8x1xf32>
    %66 = vector.broadcast %65 : vector<8x1xf32> to vector<8x32xf32>
    %67 = arith.mulf %62, %66 : vector<8x32xf32>
    %68 = vector.broadcast %47 : vector<1x32xf32> to vector<8x32xf32>
    %69 = arith.mulf %67, %68 : vector<8x32xf32>
    %70 = vector.broadcast %49 : vector<1x32xf32> to vector<8x32xf32>
    %71 = arith.addf %69, %70 : vector<8x32xf32>
    %72 = arith.truncf %71 : vector<8x32xf32> to vector<8x32xbf16>
    %c0_32 = arith.constant 0 : index
    %c0_33 = arith.constant 0 : index
    %c0_34 = arith.constant 0 : index
    %73 = vector.load %arg9[%c0_32, %c0_33, %c0_34] : memref<1x32x64xbf16, #tpu.memory_space<vmem>>, vector<1x32x64xbf16>
    %74 = vector.shape_cast %73 : vector<1x32x64xbf16> to vector<32x64xbf16>
    %cst_35 = arith.constant dense<0.000000e+00> : vector<8x64xf32>
    %75 = tpu.matmul %72, %74, %cst_35 {dimension_numbers = #tpu.dot_dimension_numbers<[1], [0], [0], [1], [0, 0, 1, 1], [], []>} : vector<8x32xbf16>, vector<32x64xbf16>, vector<8x64xf32> -> vector<8x64xf32>
    %c0_36 = arith.constant 0 : index
    %c0_37 = arith.constant 0 : index
    %c0_38 = arith.constant 0 : index
    %76 = vector.load %arg10[%c0_36, %c0_37, %c0_38] : memref<1x1x64xf32, #tpu.memory_space<vmem>>, vector<1x1x64xf32>
    %77 = vector.shape_cast %76 : vector<1x1x64xf32> to vector<1x64xf32>
    %78 = vector.broadcast %77 : vector<1x64xf32> to vector<8x64xf32>
    %79 = arith.addf %75, %78 : vector<8x64xf32>
    %cst_39 = arith.constant 0.000000e+00 : f32
    %80 = vector.broadcast %cst_39 : f32 to vector<8x64xf32>
    %81 = arith.maximumf %79, %80 : vector<8x64xf32>
    %82 = arith.truncf %81 : vector<8x64xf32> to vector<8x64xbf16>
    %c0_40 = arith.constant 0 : index
    %c0_41 = arith.constant 0 : index
    %c0_42 = arith.constant 0 : index
    %83 = vector.load %arg11[%c0_40, %c0_41, %c0_42] : memref<1x64x32xbf16, #tpu.memory_space<vmem>>, vector<1x64x32xbf16>
    %84 = vector.shape_cast %83 : vector<1x64x32xbf16> to vector<64x32xbf16>
    %cst_43 = arith.constant dense<0.000000e+00> : vector<8x32xf32>
    %85 = tpu.matmul %82, %84, %cst_43 {dimension_numbers = #tpu.dot_dimension_numbers<[1], [0], [0], [1], [0, 0, 1, 1], [], []>} : vector<8x64xbf16>, vector<64x32xbf16>, vector<8x32xf32> -> vector<8x32xf32>
    %c0_44 = arith.constant 0 : index
    %c0_45 = arith.constant 0 : index
    %c0_46 = arith.constant 0 : index
    %86 = vector.load %arg12[%c0_44, %c0_45, %c0_46] : memref<1x1x32xf32, #tpu.memory_space<vmem>>, vector<1x1x32xf32>
    %87 = vector.shape_cast %86 : vector<1x1x32xf32> to vector<1x32xf32>
    %88 = vector.broadcast %87 : vector<1x32xf32> to vector<8x32xf32>
    %89 = arith.addf %85, %88 : vector<8x32xf32>
    %90 = arith.addf %71, %89 : vector<8x32xf32>
    %c0_47 = arith.constant 0 : index
    %c0_48 = arith.constant 0 : index
    %c0_49 = arith.constant 0 : index
    %91 = vector.load %arg13[%c0_47, %c0_48, %c0_49] : memref<1x1x32xf32, #tpu.memory_space<vmem>>, vector<1x1x32xf32>
    %92 = vector.shape_cast %91 : vector<1x1x32xf32> to vector<1x32xf32>
    %c0_50 = arith.constant 0 : index
    %c0_51 = arith.constant 0 : index
    %c0_52 = arith.constant 0 : index
    %93 = vector.load %arg14[%c0_50, %c0_51, %c0_52] : memref<1x1x32xf32, #tpu.memory_space<vmem>>, vector<1x1x32xf32>
    %94 = vector.shape_cast %93 : vector<1x1x32xf32> to vector<1x32xf32>
    %cst_53 = arith.constant dense<0.000000e+00> : vector<8xf32>
    %95 = vector.multi_reduction <add>, %90, %cst_53 [1] : vector<8x32xf32> to vector<8xf32>
    %96 = vector.shape_cast %95 : vector<8xf32> to vector<8x1xf32>
    %cst_54 = arith.constant 3.200000e+01 : f32
    %97 = vector.broadcast %cst_54 : f32 to vector<8x1xf32>
    %98 = arith.divf %96, %97 : vector<8x1xf32>
    %99 = vector.broadcast %98 : vector<8x1xf32> to vector<8x32xf32>
    %100 = arith.subf %90, %99 : vector<8x32xf32>
    %101 = arith.mulf %100, %100 : vector<8x32xf32>
    %cst_55 = arith.constant dense<0.000000e+00> : vector<8xf32>
    %102 = vector.multi_reduction <add>, %101, %cst_55 [1] : vector<8x32xf32> to vector<8xf32>
    %103 = vector.shape_cast %102 : vector<8xf32> to vector<8x1xf32>
    %cst_56 = arith.constant 3.200000e+01 : f32
    %104 = vector.broadcast %cst_56 : f32 to vector<8x1xf32>
    %105 = arith.divf %103, %104 : vector<8x1xf32>
    %106 = vector.broadcast %98 : vector<8x1xf32> to vector<8x32xf32>
    %107 = arith.subf %90, %106 : vector<8x32xf32>
    %cst_57 = arith.constant 9.99999974E-6 : f32
    %108 = vector.broadcast %cst_57 : f32 to vector<8x1xf32>
    %109 = arith.addf %105, %108 : vector<8x1xf32>
    %110 = math.rsqrt %109 : vector<8x1xf32>
    %111 = vector.broadcast %110 : vector<8x1xf32> to vector<8x32xf32>
    %112 = arith.mulf %107, %111 : vector<8x32xf32>
    %113 = vector.broadcast %92 : vector<1x32xf32> to vector<8x32xf32>
    %114 = arith.mulf %112, %113 : vector<8x32xf32>
    %115 = vector.broadcast %94 : vector<1x32xf32> to vector<8x32xf32>
    %116 = arith.addf %114, %115 : vector<8x32xf32>
    %c0_58 = arith.constant 0 : index
    %c0_59 = arith.constant 0 : index
    %c0_60 = arith.constant 0 : index
    %117 = vector.load %arg17[%c0_58, %c0_59, %c0_60] : memref<1x8x32xf32, #tpu.memory_space<vmem>>, vector<1x8x32xf32>
    %118 = vector.shape_cast %117 : vector<1x8x32xf32> to vector<8x32xf32>
    %119 = vector.shape_cast %116 : vector<8x32xf32> to vector<1x8x32xf32>
    tpu.vector_store %arg17[%c0_58, %c0_59, %c0_60], %119 {strides = array<i32>} : memref<1x8x32xf32, #tpu.memory_space<vmem>>, vector<1x8x32xf32>,
    %c1_i32 = arith.constant 1 : i32
    %120 = arith.cmpi eq, %arg1, %c1_i32 : i32
    %121 = arith.extui %120 : i1 to i32
    %c0_i32_61 = arith.constant 0 : i32
    %122 = arith.cmpi ne, %121, %c0_i32_61 : i32
    scf.if %122 {
      %c0_62 = arith.constant 0 : index
      %c0_63 = arith.constant 0 : index
      %123 = vector.load %arg15[%c0_62, %c0_63] : memref<1x32xf32, #tpu.memory_space<vmem>>, vector<1x32xf32>
      %c0_64 = arith.constant 0 : index
      %c0_65 = arith.constant 0 : index
      %124 = vector.load %arg16[%c0_64, %c0_65] : memref<1x32xf32, #tpu.memory_space<vmem>>, vector<1x32xf32>
      %cst_66 = arith.constant dense<0.000000e+00> : vector<8xf32>
      %125 = vector.multi_reduction <add>, %116, %cst_66 [1] : vector<8x32xf32> to vector<8xf32>
      %126 = vector.shape_cast %125 : vector<8xf32> to vector<8x1xf32>
      %cst_67 = arith.constant 3.200000e+01 : f32
      %127 = vector.broadcast %cst_67 : f32 to vector<8x1xf32>
      %128 = arith.divf %126, %127 : vector<8x1xf32>
      %129 = vector.broadcast %128 : vector<8x1xf32> to vector<8x32xf32>
      %130 = arith.subf %116, %129 : vector<8x32xf32>
      %131 = arith.mulf %130, %130 : vector<8x32xf32>
      %cst_68 = arith.constant dense<0.000000e+00> : vector<8xf32>
      %132 = vector.multi_reduction <add>, %131, %cst_68 [1] : vector<8x32xf32> to vector<8xf32>
      %133 = vector.shape_cast %132 : vector<8xf32> to vector<8x1xf32>
      %cst_69 = arith.constant 3.200000e+01 : f32
      %134 = vector.broadcast %cst_69 : f32 to vector<8x1xf32>
      %135 = arith.divf %133, %134 : vector<8x1xf32>
      %136 = vector.broadcast %128 : vector<8x1xf32> to vector<8x32xf32>
      %137 = arith.subf %116, %136 : vector<8x32xf32>
      %cst_70 = arith.constant 9.99999974E-6 : f32
      %138 = vector.broadcast %cst_70 : f32 to vector<8x1xf32>
      %139 = arith.addf %135, %138 : vector<8x1xf32>
      %140 = math.rsqrt %139 : vector<8x1xf32>
      %141 = vector.broadcast %140 : vector<8x1xf32> to vector<8x32xf32>
      %142 = arith.mulf %137, %141 : vector<8x32xf32>
      %143 = vector.broadcast %123 : vector<1x32xf32> to vector<8x32xf32>
      %144 = arith.mulf %142, %143 : vector<8x32xf32>
      %145 = vector.broadcast %124 : vector<1x32xf32> to vector<8x32xf32>
      %146 = arith.addf %144, %145 : vector<8x32xf32>
      %c0_71 = arith.constant 0 : index
      %c0_72 = arith.constant 0 : index
      %c0_73 = arith.constant 0 : index
      %147 = vector.load %arg17[%c0_71, %c0_72, %c0_73] : memref<1x8x32xf32, #tpu.memory_space<vmem>>, vector<1x8x32xf32>
      %148 = vector.shape_cast %147 : vector<1x8x32xf32> to vector<8x32xf32>
      %149 = vector.shape_cast %146 : vector<8x32xf32> to vector<1x8x32xf32>
      tpu.vector_store %arg17[%c0_71, %c0_72, %c0_73], %149 {strides = array<i32>} : memref<1x8x32xf32, #tpu.memory_space<vmem>>, vector<1x8x32xf32>,
    } else {
    }
    return
  }
  func.func @transform_0(%arg0: i32, %arg1: i32) -> (i32, i32, i32) {
    %c0_i32 = arith.constant 0 : i32
    %c0_i32_0 = arith.constant 0 : i32
    %c0_i32_1 = arith.constant 0 : i32
    return %arg0, %c0_i32, %c0_i32_0 : i32, i32, i32
  }
  func.func @transform_1(%arg0: i32, %arg1: i32) -> (i32, i32, i32) {
    %c0_i32 = arith.constant 0 : i32
    %c0_i32_0 = arith.constant 0 : i32
    %c0_i32_1 = arith.constant 0 : i32
    return %arg1, %c0_i32, %c0_i32_0 : i32, i32, i32
  }
  func.func @transform_2(%arg0: i32, %arg1: i32) -> (i32, i32, i32) {
    %c0_i32 = arith.constant 0 : i32
    %c0_i32_0 = arith.constant 0 : i32
    %c0_i32_1 = arith.constant 0 : i32
    return %arg1, %c0_i32, %c0_i32_0 : i32, i32, i32
  }
  func.func @transform_3(%arg0: i32, %arg1: i32) -> (i32, i32, i32) {
    %c0_i32 = arith.constant 0 : i32
    %c0_i32_0 = arith.constant 0 : i32
    %c0_i32_1 = arith.constant 0 : i32
    return %arg1, %c0_i32, %c0_i32_0 : i32, i32, i32
  }
  func.func @transform_4(%arg0: i32, %arg1: i32) -> (i32, i32, i32) {
    %c0_i32 = arith.constant 0 : i32
    %c0_i32_0 = arith.constant 0 : i32
    %c0_i32_1 = arith.constant 0 : i32
    return %arg1, %c0_i32, %c0_i32_0 : i32, i32, i32
  }
  func.func @transform_5(%arg0: i32, %arg1: i32) -> (i32, i32, i32) {
    %c0_i32 = arith.constant 0 : i32
    %c0_i32_0 = arith.constant 0 : i32
    %c0_i32_1 = arith.constant 0 : i32
    return %arg1, %c0_i32, %c0_i32_0 : i32, i32, i32
  }
  func.func @transform_6(%arg0: i32, %arg1: i32) -> (i32, i32, i32) {
    %c0_i32 = arith.constant 0 : i32
    %c0_i32_0 = arith.constant 0 : i32
    %c0_i32_1 = arith.constant 0 : i32
    return %arg1, %c0_i32, %c0_i32_0 : i32, i32, i32
  }
  func.func @transform_7(%arg0: i32, %arg1: i32) -> (i32, i32, i32) {
    %c0_i32 = arith.constant 0 : i32
    %c0_i32_0 = arith.constant 0 : i32
    %c0_i32_1 = arith.constant 0 : i32
    return %arg1, %c0_i32, %c0_i32_0 : i32, i32, i32
  }
  func.func @transform_8(%arg0: i32, %arg1: i32) -> (i32, i32, i32) {
    %c0_i32 = arith.constant 0 : i32
    %c0_i32_0 = arith.constant 0 : i32
    %c0_i32_1 = arith.constant 0 : i32
    return %arg1, %c0_i32, %c0_i32_0 : i32, i32, i32
  }
  func.func @transform_9(%arg0: i32, %arg1: i32) -> (i32, i32, i32) {
    %c0_i32 = arith.constant 0 : i32
    %c0_i32_0 = arith.constant 0 : i32
    %c0_i32_1 = arith.constant 0 : i32
    return %arg1, %c0_i32, %c0_i32_0 : i32, i32, i32
  }
  func.func @transform_10(%arg0: i32, %arg1: i32) -> (i32, i32, i32) {
    %c0_i32 = arith.constant 0 : i32
    %c0_i32_0 = arith.constant 0 : i32
    %c0_i32_1 = arith.constant 0 : i32
    return %arg1, %c0_i32, %c0_i32_0 : i32, i32, i32
  }
  func.func @transform_11(%arg0: i32, %arg1: i32) -> (i32, i32, i32) {
    %c0_i32 = arith.constant 0 : i32
    %c0_i32_0 = arith.constant 0 : i32
    %c0_i32_1 = arith.constant 0 : i32
    return %arg1, %c0_i32, %c0_i32_0 : i32, i32, i32
  }
  func.func @transform_12(%arg0: i32, %arg1: i32) -> (i32, i32, i32) {
    %c0_i32 = arith.constant 0 : i32
    %c0_i32_0 = arith.constant 0 : i32
    %c0_i32_1 = arith.constant 0 : i32
    return %arg1, %c0_i32, %c0_i32_0 : i32, i32, i32
  }
  func.func @transform_13(%arg0: i32, %arg1: i32) -> (i32, i32) {
    %c0_i32 = arith.constant 0 : i32
    %c0_i32_0 = arith.constant 0 : i32
    %c0_i32_1 = arith.constant 0 : i32
    return %c0_i32, %c0_i32_0 : i32, i32
  }
  func.func @transform_14(%arg0: i32, %arg1: i32) -> (i32, i32) {
    %c0_i32 = arith.constant 0 : i32
    %c0_i32_0 = arith.constant 0 : i32
    %c0_i32_1 = arith.constant 0 : i32
    return %c0_i32, %c0_i32_0 : i32, i32
  }
  func.func @transform_15(%arg0: i32, %arg1: i32) -> (i32, i32, i32) {
    %c0_i32 = arith.constant 0 : i32
    %c0_i32_0 = arith.constant 0 : i32
    %c0_i32_1 = arith.constant 0 : i32
    return %arg0, %c0_i32, %c0_i32_0 : i32, i32, i32
  }
}

</mosaic_0001>

<bundles_post_ra>
// kernel: _lambda_.1
= control target key start
LH: loop header
LB: loop body
LE: loop exit
PB: predicated region body
PF: predicated region fallthrough
CT: control target
= control target key end

     0   :  { %s3441_s0 = inlined_call_operand.vmem [shape: f32[2,8,32], index: 0, kind: input, shape index: {}]   ;;  %s3442_s1 = inlined_call_operand.hbm [shape: bf16[2,32,96], index: 1, kind: input, shape index: {}]   ;;  %s3443_s2 = inlined_call_operand.vmem [shape: f32[2,1,96], index: 2, kind: input, shape index: {}]   ;;  %s3444_s3 = inlined_call_operand.hbm [shape: bf16[2,32,32], index: 3, kind: input, shape index: {}]   ;;  %s3445_s4 = inlined_call_operand.vmem [shape: f32[2,1,32], index: 4, kind: input, shape index: {}, may-alias: {4,6,10,12}]   ;;  %s3446_s5 = inlined_call_operand.vmem [shape: f32[2,1,32], index: 5, kind: input, shape index: {}, may-alias: {5,11}]   ;;  %s3447_s6 = inlined_call_operand.vmem [shape: f32[2,1,32], index: 6, kind: input, shape index: {}, may-alias: {4,6,10,12}]   ;;  %s3448_s7 = inlined_call_operand.vmem [shape: bf16[2,32,64], index: 7, kind: input, shape index: {}]   ;;  %s3449_s8 = inlined_call_operand.vmem [shape: f32[2,1,64], index: 8, kind: input, shape index: {}]   ;;  %s3450_s9 = inlined_call_operand.hbm [shape: bf16[2,64,32], index: 9, kind: input, shape index: {}]   ;;  %s3451_s10 = inlined_call_operand.vmem [shape: f32[2,1,32], index: 10, kind: input, shape index: {}, may-alias: {4,6,10,12}]   ;;  %s3452_s11 = inlined_call_operand.vmem [shape: f32[2,1,32], index: 11, kind: input, shape index: {}, may-alias: {5,11}]   ;;  %s3453_s12 = inlined_call_operand.vmem [shape: f32[2,1,32], index: 12, kind: input, shape index: {}, may-alias: {4,6,10,12}]   ;;  %s3454_s13 = inlined_call_operand.vmem [shape: f32[1,32], index: 13, kind: input, shape index: {}]   ;;  %s3455_s14 = inlined_call_operand.vmem [shape: f32[1,32], index: 14, kind: input, shape index: {}]   ;;  %s3456_s15 = inlined_call_operand.hbm [shape: f32[2,8,32], index: 15, kind: output, shape index: {}]  }
   0x1   :  { %3482 = sst [smem:[#allocation27_spill]] %s3441_s0 }
   0x2   :  { %3483 = sst [smem:[#allocation28_spill]] %s3442_s1 }
   0x3   :  { %3484 = sst [smem:[#allocation29_spill]] %s3444_s3 }
   0x4   :  { %3485 = sst [smem:[#allocation30_spill]] %s3446_s5 }
   0x5   :  { %3486 = sst [smem:[#allocation31_spill]] %s3447_s6 }
   0x6   :  { %3487 = sst [smem:[#allocation32_spill]] %s3448_s7 }
   0x7   :  { %3488 = sst [smem:[#allocation33_spill]] %s3449_s8 }
   0x8   :  { %3489 = sst [smem:[#allocation34_spill]] %s3450_s9 }
   0x9   :  { %3490 = sst [smem:[#allocation35_spill]] %s3451_s10 }
   0xa   :  { %3491 = sst [smem:[#allocation36_spill]] %s3452_s11 }
   0xb   :  { %3492 = sst [smem:[#allocation37_spill]] %s3453_s12 }
   0xc   :  { %3493 = sst [smem:[#allocation38_spill]] %s3454_s13 }
   0xd   :  { %3494 = sst [smem:[#allocation39_spill]] %s3455_s14 }
   0xe   :  { %3495 = sst [smem:[#allocation40_spill]] %s3456_s15 }
   0xf   :  { %20 = vsyncpa [#allocation3], 0 }
  0x10   :  { %22 = vsyncpa [#allocation3 + $0x1], 0 }
  0x11   :  { %23 = vsyncpa [#allocation6], 0 }
  0x12   :  { %25 = vsyncpa [#allocation6 + $0x1], 0 }
  0x13   :  { %26 = vsyncpa [#allocation4], 0 }
  0x14   :  { %28 = vsyncpa [#allocation4 + $0x1], 0  ;;  %s2894_s18 = smov 0   ;;  %s2896_s19 = smov 0  }
  0x15   :  { %s2898_s20 = smov 0   ;;  %s2900_s21 = smov 0  }
  0x16   :  { %s2902_s22 = smov 0   ;;  %s2904_s23 = smov 0  }
  0x17   :  { %s2906_s24 = smov 0   ;;  %s2908_s25 = smov 0  }
  0x18   :  { %s2910_s26 = smov 0   ;;  %s2912_s27 = smov 0  }
  0x19   :  { %s2914_s28 = smov 0  }
  0x1a LB: > { %3496 = sst [smem:[#allocation12_spill]] %s2754_s18  ;;  %s2948_s29 = sadd.s32 4294967295, %s2794_s28   ;;  %s2794_s28 = sphi %s2914_s28, %s34_s28   ;;  %s2790_s27 = sphi %s2912_s27, %s3567_s27   ;;  %s2786_s26 = sphi %s2910_s26, %s3566_s26   ;;  %s2782_s25 = sphi %s2908_s25, %s3565_s25   ;;  %s2778_s24 = sphi %s2906_s24, %s3564_s24   ;;  %s2774_s23 = sphi %s2904_s23, %s3563_s23   ;;  %s2770_s22 = sphi %s2902_s22, %s3562_s22   ;;  %s2766_s21 = sphi %s2900_s21, %s3561_s21   ;;  %s2762_s20 = sphi %s2898_s20, %s3560_s20   ;;  %s2758_s19 = sphi %s2896_s19, %s3559_s19   ;;  %s2754_s18 = sphi %s2894_s18, %s3558_s18  }
  0x1b   : > { %3497 = sst [smem:[#allocation13_spill]] %s2758_s19  ;;  %s2241_s30 = sadd.s32 4294967294, %s2794_s28  }
  0x1c   : > { %3498 = sst [smem:[#allocation14_spill]] %s2762_s20  ;;  %s43_s16 = sadd.s32 1, %s2786_s26 }
  0x1d   : > { %3499 = sst [smem:[#allocation15_spill]] %s2770_s22  ;;  %s46_s17 = sadd.s32 1, %s2790_s27 }
  0x1e   : > { %3500 = sst [smem:[#allocation16_spill]] %s2774_s23  ;;  %p44_p0 = scmp.ge.s32.totalorder %s43_s16, 2 }
  0x1f   : > { %3501 = sst [smem:[#allocation17_spill]] %s2782_s25  ;;  %s79_s15 = sadd.s32 1, %s2774_s23 }
  0x20   : > { %3502 = sst [smem:[#allocation18_spill]] %s2786_s26  ;;  %p86_p1 = scmp.ne.s32.totalorder %s2774_s23, %s2770_s22 }
  0x21   : > { %3503 = sst [smem:[#allocation19_spill]] %s2790_s27  ;;  %p87_p2 = scmp.eq.s32.totalorder %s2794_s28, 0 }
  0x22   : > { %3504 = sst [smem:[#allocation20_spill]] %s2794_s28  ;;  %s3569_s16 = smov (%p44_p0, %s43_s16), 0 }
  0x23   : > { %3505 = sst [smem:[#allocation21_spill]] %s3569_s16  ;;  %s3571_s17 = smov (!%p44_p0, %s46_s17), %s2790_s27 }
  0x24   : > { %s76_s14 = ssub.s32 %s2786_s26, %s3569_s16  ;;  %p2962_p3 = por %p87_p2, %p86_p1 }
  0x25   : > { %p48_p4 = scmp.ge.s32.totalorder %s3571_s17, 2  ;;  %p77_p5 = scmp.eq.s32.totalorder %s76_s14, 0 }
  0x26   : > { %p92_p6 = scmp.ne.s32.totalorder %s2770_s22, %s2766_s21  ;;  %p93_p7 = scmp.eq.s32.totalorder %s2948_s29, 0 }
  0x27   : > { %s3573_s17 = smov (%p48_p4, %s3571_s17), 0  ;;  %s433_s10 = sadd.s32 1, %s2762_s20 }
  0x28   : > { %3507 = sst [smem:[#allocation22_spill]] %s3573_s17  ;;  %p2973_p8 = por %p93_p7, %p92_p6 }
  0x29   : > { %s2971_s12 = scalar_select %p77_p5, %s2774_s23, %s79_s15  }
  0x2a   : > { %s3509_s16 = scalar_select %p2973_p8, 1, 0 }
  0x2b   : > { %3508 = sst [smem:[#allocation23_spill]] %s2971_s12  ;;  %s430_s11 = ssub.s32 %s2790_s27, %s3573_s17 }
  0x2c   : > { %p431_p9 = scmp.eq.s32.totalorder %s430_s11, 0  ;;  %p443_p10 = scmp.ne.s32.totalorder %s2762_s20, %s2758_s19 }
  0x2d   : > { %p444_p11 = scmp.eq.s32.totalorder %s2948_s29, 3  ;;  %p449_p13 = scmp.ne.s32.totalorder %s2758_s19, %s2754_s18 }
  0x2e   : > { %s2984_s14 = scalar_select %p431_p9, %s2762_s20, %s433_s10  }
  0x2f   : > { %p2986_p12 = por %p444_p11, %p443_p10  ;;  %p450_p0 = scmp.eq.s32.totalorder %s2241_s30, 3 }
  0x30   : > { %3510 = sst [smem:[#allocation24_spill]] %s2984_s14  ;;  %p2441_p1 = scmp.lt.s32.totalorder %s2794_s28, 4 }
  0x31   : > { %s3511_s21 = scalar_select %p2986_p12, 1, 0 }
  0x32   : > { %s2994_s15 = sand.u32 1, %s2774_s23   ;;  %p2996_p2 = por %p450_p0, %p449_p13 }
  0x33   : > { %3512 = sst [smem:[#allocation25_spill]] %s3511_s21  ;;  %s3467_s11 = sshll.u32 %s2994_s15, 4 }
  0x34   : > { %s3513_s17 = scalar_select %p2996_p2, 1, 0 }
  0x35   : > { %s3468_s27 = sshll.u32 %s2786_s26, 8  ;;  %p3004_p4 = pnand %p2441_p1, %p2962_p3 }
  0x36   : > { %3514 = sst [smem:[#allocation26_spill]] %s3513_s17  ;;  %s510_s12 = sand.u32 1, %s2794_s28  }
  0x37   : > { %s3516_s3 = sld [smem:[#allocation29_spill]]  ;;  %s514_s20 = scalar_lea.vmem [#allocation5], %s3467_s11 }
  0x38   : > { %s521_s17 = sshll.u32 %s514_s20, 4  ;;  %s3021_s13 = scalar_lea.sflag [#allocation6], %s510_s12  ;;  %s3018_s17 = int_to_ptr.vmem [resolvable:$true] %s521_s17 }
  0x39   : > { %p3027_p6 = pneg %p3004_p4 }
  0x3d   : > { %s3014_s23 = scalar_lea.hbm %s3516_s3, %s3468_s27  ;;  %s2583_s20 = scalar_lea.hbm %s3516_s3, 512 }
  0x3e   : > { %s2578_s18 = scalar_lea.hbm %s3014_s23, 256  ;;  %p2584_p10 = scmp.lt.u32.totalorder %s3014_s23, %s3516_s3 }
  0x3f   : > { %p2579_p5 = scmp.ne.s32.totalorder %s3014_s23, %s2578_s18  ;;  %p2585_p11 = scmp.lt.u32.totalorder %s2583_s20, %s2578_s18 }
  0x40   : > { %p2587_p0 = scmp.lt.u32.totalorder %s2578_s18, %s3014_s23 }
  0x41   : > { %p2581_p7 = pnand %p3027_p6, %p2579_p5  ;;  %p2586_p13 = por %p2585_p11, %p2584_p10 }
  0x43   : > { %p2582_p9 = pneg %p2581_p7  ;;  %p2588_p1 = por %p2587_p0, %p2586_p13 }
  0x45   : > { %p2589_p3 = pnand %p2588_p1, %p2582_p9 }
  0x47   : > { %2592 = shalt.err (!%p2589_p3)
}
  0x48   : > { %s2593_s12 = scalar_lea.vmem %s3018_s17, 256  ;;  %s2796_s14 = smov [#allocation5]  }
  0x49   : > { %p2594_p5 = scmp.ne.s32.totalorder %s3018_s17, %s2593_s12  ;;  %s2598_s30 = sshll.u32 %s2796_s14, 4  ;;  %s2599_s30 = int_to_ptr.vmem [resolvable:$false] %s2598_s30 }
  0x4a   : > { %s2600_s27 = scalar_lea.vmem %s2599_s30, 512  ;;  %p2601_p12 = scmp.lt.s32.totalorder %s3018_s17, %s2599_s30 }
  0x4b   : > { %p2596_p7 = pnand %p2594_p5, %p3027_p6  ;;  %p2602_p8 = scmp.lt.s32.totalorder %s2600_s27, %s2593_s12 }
  0x4d   : > { %p2597_p2 = pneg %p2596_p7  ;;  %p2603_p10 = por %p2602_p8, %p2601_p12 }
  0x4f   : > { %p2604_p11 = pnand %p2603_p10, %p2597_p2 }
  0x51   : > { %2607 = shalt.err (!%p2604_p11)
}
  0x52   : > { %s3471_s18 = smov 64   ;;  %s3473_s11 = smov 4  }
  0x53   : > { %2433 = dma.hbm_to_vmem [thread:$0]  (!%p3004_p4), %s3014_s23, 256, %s3018_s17, %s3021_s13, %s3471_s18, %s3471_s18, %s3473_s11  }
  0x54   : > { %p600_p8 = scmp.lt.s32.totalorder %s2794_s28, 5  ;;  %p3518_p12 = scmp.ge.s32.totalorder %s2794_s28, 1 }
  0x55   : > { %s3520_s12 = sshll.u32 %s2786_s26, 8  ;;  %s3521_s1 = sld [smem:[#allocation28_spill]] }
  0x56   : > { %p3057_p2 = pnand %p3518_p12, %p600_p8  ;;  %s3522_s3 = sshll.u32 %s2994_s15, 4 }
  0x57   : > { %s487_s8 = scalar_lea.vmem [#allocation2], %s3522_s3  ;;  %s2250_s23 = sshll.u32 %s2994_s15, 5 }
  0x58   : > { %s3519_s20 = scalar_select %p3057_p2, 1, 0 }
  0x59   : > { %s494_s7 = sshll.u32 %s487_s8, 4  ;;  %s484_s17 = scalar_lea.sflag [#allocation3], %s2994_s15  ;;  %s3070_s7 = int_to_ptr.vmem [resolvable:$true] %s494_s7 }
  0x5b   : > { %s3066_s27 = scalar_lea.hbm %s3521_s1, %s3520_s12  ;;  %s2613_s12 = scalar_lea.hbm %s3521_s1, 512 }
  0x5c   : > { %s2608_s18 = scalar_lea.hbm %s3066_s27, 256  ;;  %p2614_p0 = scmp.lt.u32.totalorder %s3066_s27, %s3521_s1 }
  0x5d   : > { %p2609_p3 = scmp.ne.s32.totalorder %s3066_s27, %s2608_s18  ;;  %p2615_p1 = scmp.lt.u32.totalorder %s2613_s12, %s2608_s18 }
  0x5e   : > { %p2617_p7 = scmp.lt.u32.totalorder %s2608_s18, %s3066_s27 }
  0x5f   : > { %p2611_p9 = pnand %p2609_p3, %p3027_p6  ;;  %p2616_p5 = por %p2615_p1, %p2614_p0 }
  0x61   : > { %p2612_p13 = pneg %p2611_p9  ;;  %p2618_p10 = por %p2617_p7, %p2616_p5 }
  0x63   : > { %p2619_p11 = pnand %p2618_p10, %p2612_p13 }
  0x65   : > { %2622 = shalt.err (!%p2619_p11)
}
  0x66   : > { %s2623_s3 = scalar_lea.vmem %s3070_s7, 256  ;;  %s2799_s8 = smov [#allocation2]  }
  0x67   : > { %p2624_p8 = scmp.ne.s32.totalorder %s3070_s7, %s2623_s3  ;;  %s2628_s11 = sshll.u32 %s2799_s8, 4  ;;  %s2629_s11 = int_to_ptr.vmem [resolvable:$false] %s2628_s11 }
  0x68   : > { %s2630_s28 = scalar_lea.vmem %s2629_s11, 512  ;;  %p2631_p9 = scmp.lt.s32.totalorder %s3070_s7, %s2629_s11 }
  0x69   : > { %p2626_p12 = pnand %p2624_p8, %p3027_p6  ;;  %p2632_p2 = scmp.lt.s32.totalorder %s2630_s28, %s2623_s3 }
  0x6b   : > { %p2627_p3 = pneg %p2626_p12  ;;  %p2633_p0 = por %p2632_p2, %p2631_p9 }
  0x6d   : > { %p2634_p1 = pnand %p2633_p0, %p2627_p3 }
  0x6f   : > { %2637 = shalt.err (!%p2634_p1)
}
  0x70   : > { %s3523_s18 = smov 4   ;;  %s3524_s14 = smov 64  }
  0x71   : > { %2430 = dma.hbm_to_vmem [thread:$0]  (!%p3004_p4), %s3066_s27, 256, %s3070_s7, %s484_s17, %s3524_s14, %s3524_s14, %s3523_s18  }
  0x72   : > { %s2303_s12 = sshll.u32 %s2786_s26, 9  ;;  %s3525_s9 = sld [smem:[#allocation34_spill]] }
  0x73   : > { %s567_s11 = scalar_lea.vmem [#allocation7], %s2250_s23 }
  0x74   : > { %s574_s28 = sshll.u32 %s567_s11, 4  ;;  %s3108_s28 = int_to_ptr.vmem [resolvable:$true] %s574_s28 }
  0x78   : > { %s3104_s3 = scalar_lea.hbm %s3525_s9, %s2303_s12  ;;  %s2643_s17 = scalar_lea.hbm %s3525_s9, 1024 }
  0x79   : > { %s2638_s1 = scalar_lea.hbm %s3104_s3, 512  ;;  %p2644_p7 = scmp.lt.u32.totalorder %s3104_s3, %s3525_s9 }
  0x7a   : > { %p2639_p2 = scmp.ne.s32.totalorder %s3104_s3, %s2638_s1  ;;  %p2645_p10 = scmp.lt.u32.totalorder %s2643_s17, %s2638_s1 }
  0x7b   : > { %p2647_p8 = scmp.lt.u32.totalorder %s2638_s1, %s3104_s3 }
  0x7c   : > { %p2641_p13 = pnand %p2639_p2, %p3027_p6  ;;  %p2646_p11 = por %p2645_p10, %p2644_p7 }
  0x7e   : > { %p2642_p5 = pneg %p2641_p13  ;;  %p2648_p12 = por %p2647_p8, %p2646_p11 }
  0x80   : > { %p2649_p3 = pnand %p2648_p12, %p2642_p5 }
  0x82   : > { %2652 = shalt.err (!%p2649_p3)
}
  0x83   : > { %s2653_s15 = scalar_lea.vmem %s3108_s28, 512  ;;  %s2800_s23 = smov [#allocation7]  }
  0x84   : > { %p2654_p9 = scmp.ne.s32.totalorder %s3108_s28, %s2653_s15  ;;  %s2658_s8 = sshll.u32 %s2800_s23, 4  ;;  %s2659_s8 = int_to_ptr.vmem [resolvable:$false] %s2658_s8 }
  0x85   : > { %s2660_s11 = scalar_lea.vmem %s2659_s8, 1024  ;;  %p2661_p2 = scmp.lt.s32.totalorder %s3108_s28, %s2659_s8 }
  0x86   : > { %p2656_p0 = pnand %p2654_p9, %p3027_p6  ;;  %p2662_p13 = scmp.lt.s32.totalorder %s2660_s11, %s2653_s15 }
  0x88   : > { %p2657_p1 = pneg %p2656_p0  ;;  %p2663_p7 = por %p2662_p13, %p2661_p2 }
  0x8a   : > { %p2664_p10 = pnand %p2663_p7, %p2657_p1 }
  0x8c   : > { %2667 = shalt.err (!%p2664_p10)
}
  0x8d   : > { %2436 = dma.hbm_to_vmem [thread:$0]  (!%p3004_p4), %s3104_s3, 512, %s3108_s28, %s3021_s13, %s3524_s14, %s3524_s14, %s3523_s18  }
  0x8e   : > { %p3526_p6 = scmp.ne.s32.totalorder %s3519_s20, 0 }
  0x8f   : > { %s3138_s1 = sand.u32 (!%p3526_p6), 1, %s2770_s22   ;;  %p3527_p5 = scmp.ne.s32.totalorder (!%p3526_p6), %s3509_s16, 0 }
  0x90   : > { %604 = sbr.rel (%p3526_p6) target bundleno = 3464 (0xd88), region = 80  ;;  %s2254_s21 = sshll.u32 (!%p3526_p6), %s3138_s1, 4 }
  0x91   : > { %s607_s7 = scalar_lea.sflag (!%p3526_p6), [#allocation3], %s3138_s1  ;;  %s3142_s27 = scalar_lea.vmem (!%p3526_p6), [#allocation2], %s2254_s21 }
  0x97   : > { %2741 = dma.done.wait (%p3527_p5), %s607_s7, 256  }
  0x98   : > { %2743 = vsyncadd (%p3527_p5), %s607_s7, 4294967040  ;;  %s615_s10 = sand.u32 1, %s2948_s29   ;;  %s3149_s20 = scalar_lea.vmem [#allocation5], %s2254_s21 }
  0x99   : > { %s616_s13 = scalar_lea.sflag [#allocation6], %s615_s10 }
  0x9a   : > { %2745 = dma.done.wait (%p3527_p5), %s616_s13, 768  }
  0x9b   : > { %2747 = vsyncadd (%p3527_p5), %s616_s13, 4294966528  ;;  %s2256_s18 = sshll.u32 %s3138_s1, 5  ;;  %s3477_s14 = sand.u32 1, %s2758_s19  }
  0x9c   : > { %s2257_s3 = sshll.u32 %s3477_s14, 3  ;;  %p718_p4 = scmp.lt.s32.totalorder %s2782_s25, 1 }
  0x9d   : > { %p722_p11 = scmp.lt.s32.totalorder %s2778_s24, 1  ;;  %s3528_s0 = sld [smem:[#allocation27_spill]] }
  0x9e   : > { %s719_s29 = scalar_select %p718_p4, %s2782_s25, 1 }
  0x9f   : > { %s3163_s28 = scalar_select %p722_p11, %s2778_s24, 1 }
  0xa0   : > { %s2258_s16 = sshll.u32 %s719_s29, 3  ;;  %s3532_s8 = sld [smem:[#allocation33_spill]] }
  0xa1   : > { %s2304_s26 = sshll.u32 %s3163_s28, 4  ;;  %s3533_s21 = sld [smem:[#allocation35_spill]] }
  0xa2   : > { %s3534_s13 = sld [smem:[#allocation36_spill]]  ;;  %s3535_s29 = sld [smem:[#allocation37_spill]] }
  0xa3   : > { %s721_s30 = scalar_lea.vmem %s3528_s0, %s2258_s16  ;;  %s3531_s16 = sld [smem:[#allocation32_spill]] }
  0xa4   : > { %s3206_s5 = scalar_lea.vmem [#allocation7], %s2256_s18  ;;  %s3208_s22 = scalar_lea.vmem [#allocation8], %s2257_s3 }
  0xa5   : > { %p2261_p8 = scmp.ne.s32.totalorder %s2778_s24, 0 }
  0xa6   : > { %s741_s0 = scalar_lea.vmem %s3532_s8, %s3163_s28  ;;  %v756_v0 = vld [vmem:[%s721_s30] sm:$0xff] (!%p2261_p8)  ;;  %vm757_vm0 = vcmask (!%p2261_p8), 261120  }
  0xa7   : > { %s744_s19 = scalar_lea.vmem %s3533_s21, %s3163_s28  ;;  %755 = sbr.rel (%p2261_p8) target bundleno = 174 (0xae), region = 96  ;;  %758 = vst.msk [vmem:[%s3208_s22] sm:$0xff] (!%p2261_p8), %vm757_vm0, %v756_v0 }
  0xa8   : > { %s747_s25 = scalar_lea.vmem %s3534_s13, %s3163_s28  ;;  %s750_s6 = scalar_lea.vmem %s3535_s29, %s3163_s28 }
  0xa9   : > { %s3188_s12 = scalar_lea.vmem %s3531_s16, %s2304_s26 }
  0xae PF: > { %v2546_v1 = vld [vmem:[%s3142_s27] sm:$0xff]   ;;  %v2801_v2 = vmov 0.0   ;;  %v2547_v3 = vld [vmem:[%s3142_s27 + $0x8] sm:$0xff]   ;;  %vm2802_vm1 = vmmov 0   ;;  %vm784_vm2 = vcmask 261120   ;;  %s3536_s18 = scalar_lea.vmem %s3443_s2, %s3163_s28  ;;  %s2803_s3 = smov 104  }
  0xaf   : > { %2335 = vmatprep.subr.bf16.mxu0 %v2801_v2  ;;  %2343 = vmatprep.subr.bf16.mxu1 %v2801_v2  ;;  %v3219_v4 = vld [vmem:[%s3208_s22] sm:$0xff]  ;;  %s2804_s30 = smov 120   ;;  %s2805_s8 = smov 96   ;;  %vm916_vm3 = vcmask 1043456   ;;  %vm912_vm4 = vcmask 64512   ;;  %vm1687_vm5 = vcmask 130048  }
  0xb0   : > { %2336 = vmatpush3.bf16.msra.mxu0 %v2546_v1  ;;  %2339 = vmatprep.mubr.msk.bf16.mxu0 %vm2802_vm1, %v2801_v2  ;;  %v760_v5 = vpack.c.bf16 %v3219_v4, %v3219_v4  ;;  %v2262_v6 = vld [vmem:[%s3536_s18] ss:$0 sm:$0xff]  ;;  %s2806_s21 = smov 112   ;;  %s2807_s13 = smov 64   ;;  %vm1689_vm6 = vcmask 195584   ;;  %vm1897_vm7 = vcmask 523264  }
  0xb1   : > { %2337 = vmatprep.subr.bf16.mxu0 %v2801_v2  ;;  %2345 = vmatprep.mubr.msk.bf16.mxu1 %vm2802_vm1, %v2801_v2  ;;  %s2810_s29 = smov 16   ;;  %s2812_s17 = smov 24  }
  0xb2   : > { %s3537_s23 = scalar_lea.vmem %s3445_s4, %s3163_s28  ;;  %s3538_s1 = sld [smem:[#allocation30_spill]] }
  0xb3   : > { %s3540_s14 = sld [smem:[#allocation31_spill]]  ;;  %p2294_p12 = scmp.ne.s32.totalorder %s2778_s24, 1 }
  0xb4   : > { %2338 = vmatpush3.bf16.msra.mxu0 %v2547_v3  ;;  %s3546_s24 = sld [smem:[#allocation38_spill]] (!%p2294_p12)  ;;  %s3547_s16 = sld [smem:[#allocation39_spill]] (!%p2294_p12) }
  0xb5   : > { %2367 = vmatprep.subr.bf16.mxu0 %v2801_v2 }
  0xb7   : > { %2340 = vmatmul.mubr.msk.bf16.vlgmr.msra.gmra.mrb[0].mxu0 %vm784_vm2, %v760_v5 }
  0xb8   : > { %2369 = vmatprep.mubr.msk.bf16.mxu0 %vm2802_vm1, %v2801_v2  ;;  %s3539_s7 = scalar_lea.vmem %s3538_s1, %s3163_s28 }
  0xb9   : > { %s3541_s26 = scalar_lea.vmem %s3540_s14, %s3163_s28 }
 0x18a   : > { %v822_v7 = vpop.f32.mrb[0].mxu0 }
 0x18b   : > { %v823_v8 = vadd.f32 %v2262_v6, %v822_v7  ;;  %v2341_v9 = vpop.f32.mrb[1].mxu0 }
 0x18c   : > { %v825_v10 = vpop.f32.mrb[2].mxu0 }
 0x18d   : > { %v3235_v11 = vpack.c.bf16 %v823_v8, %v823_v8  ;;  %v2342_v12 = vpop.f32.mrb[3].mxu0 }
 0x18f   : > { %834 = vrot.lane.b32.xlu1 %v3235_v11, %s2803_s3  ;;  %830 = vrot.lane.b32.xlu0 %v3235_v11, %s2804_s30 }
 0x193   : > { %836 = vrot.lane.b32.xlu1 %v3235_v11, %s2805_s8  ;;  %832 = vrot.lane.b32.xlu0 %v3235_v11, %s2806_s21 }
 0x201   : > { %v3241_v13 = vpop.permute.xlu0 %830  ;;  %v3244_v14 = vpop.permute.xlu1 %834 }
 0x202   : > { %838 = vrot.lane.b32.xlu0 %v3241_v13, %s2805_s8 }
 0x205   : > { %v3246_v15 = vpop.permute.xlu0 %832  ;;  %v837_v16 = vpop.permute.xlu1 %836 }
 0x206   : > { %842 = vrot.lane.b32.xlu0 %v3244_v14, %s2805_s8  ;;  %840 = vrot.lane.b32.xlu1 %v3246_v15, %s2805_s8 }
 0x229   : > { %848 = vxpose.xlu1.c.b16.start.end [1/1] (short) (narrow) %v837_v16, 16 }
 0x274   : > { %v839_v17 = vpop.permute.xlu0 %838 }
 0x275   : > { %864 = vxpose.xlu0.c.b16.start.end [1/1] (short) (narrow) %v839_v17, 16 }
 0x278   : > { %v841_v18 = vpop.permute.xlu1 %840  ;;  %v843_v19 = vpop.permute.xlu0 %842 }
 0x279   : > { %880 = vxpose.xlu0.c.b16.start.end [1/1] (short) (narrow) %v841_v18, 16  ;;  %896 = vxpose.xlu1.c.b16.start.end [1/1] (short) (narrow) %v843_v19, 16 }
 0x28f   : > { %v856_v20 = vpop.trf.xlu1 }
 0x290   : > { %v918_v21 = vsel %vm916_vm3, %v856_v20, 0 }
 0x291   : > { %2344 = vmatpush3.bf16.msra.mxu1 %v918_v21 }
 0x292   : > { %2349 = vmatprep.subr.bf16.mxu1 %v2801_v2 }
 0x294   : > { %2346 = vmatmul.mubr.msk.bf16.vlgmr.msra.gmra.mrb[0].mxu1 %vm912_vm4, %v3235_v11 }
 0x295   : > { %2351 = vmatprep.mubr.msk.bf16.mxu1 %vm2802_vm1, %v2801_v2 }
 0x2db   : > { %v872_v22 = vpop.trf.xlu0 }
 0x2dc   : > { %v964_v23 = vsel %vm916_vm3, %v872_v22, 0 }
 0x2dd   : > { %2350 = vmatpush3.bf16.msra.mxu1 %v964_v23 }
 0x2de   : > { %2355 = vmatprep.subr.bf16.mxu1 %v2801_v2 }
 0x2df   : > { %v888_v24 = vpop.trf.xlu0  ;;  %v904_v26 = vpop.trf.xlu1 }
 0x2e0   : > { %2352 = vmatmul.mubr.msk.bf16.vlgmr.msra.gmra.mrb[4].mxu1 %vm912_vm4, %v3241_v13  ;;  %v1010_v25 = vsel %vm916_vm3, %v888_v24, 0  ;;  %v1056_v27 = vsel %vm916_vm3, %v904_v26, 0 }
 0x2e1   : > { %2356 = vmatpush3.bf16.msra.mxu1 %v1010_v25  ;;  %2357 = vmatprep.mubr.msk.bf16.mxu1 %vm2802_vm1, %v2801_v2 }
 0x2e2   : > { %2361 = vmatprep.subr.bf16.mxu1 %v2801_v2 }
 0x2e8   : > { %2358 = vmatmul.mubr.msk.bf16.vlgmr.msra.gmra.mrb[8].mxu1 %vm912_vm4, %v3246_v15 }
 0x2e9   : > { %2362 = vmatpush3.bf16.msra.mxu1 %v1056_v27  ;;  %2363 = vmatprep.mubr.msk.bf16.mxu1 %vm2802_vm1, %v2801_v2 }
 0x2ea   : > { %2373 = vmatprep.subr.bf16.mxu1 %v2801_v2 }
 0x2f0   : > { %2364 = vmatmul.mubr.msk.bf16.vlgmr.msra.gmra.mrb[12].mxu1 %vm912_vm4, %v3244_v14 }
 0x2f1   : > { %2375 = vmatprep.mubr.msk.bf16.mxu1 %vm2802_vm1, %v2801_v2 }
 0x367   : > { %v954_v28 = vpop.f32.mrb[0].mxu1 }
 0x368   : > { %v1098_v29 = vmul.f32 0.35355338, %v954_v28  ;;  %v2347_v30 = vpop.f32.mrb[1].mxu1 }
 0x369   : > { %v957_v31 = vpop.f32.mrb[2].mxu1 }
 0x36a   : > { %v2348_v32 = vpop.f32.mrb[3].mxu1  ;;  %v1102_v33 = vsel %vm912_vm4, %v1098_v29, -inf }
 0x36b   : > { %1103 = vmax.xlane.f32.xlu0 %v1102_v33 }
 0x3b3   : > { %v1000_v34 = vpop.f32.mrb[4].mxu1 }
 0x3b4   : > { %v1099_v35 = vmul.f32 0.35355338, %v1000_v34  ;;  %v2353_v36 = vpop.f32.mrb[5].mxu1 }
 0x3b5   : > { %v1003_v37 = vpop.f32.mrb[6].mxu1 }
 0x3b6   : > { %v2354_v38 = vpop.f32.mrb[7].mxu1  ;;  %v1105_v39 = vsel %vm912_vm4, %v1099_v35, -inf }
 0x3b7   : > { %1106 = vmax.xlane.f32.xlu1 %v1105_v39 }
 0x3bb   : > { %v1046_v40 = vpop.f32.mrb[8].mxu1 }
 0x3bc   : > { %v1100_v41 = vmul.f32 0.35355338, %v1046_v40  ;;  %v2359_v42 = vpop.f32.mrb[9].mxu1 }
 0x3bd   : > { %v1049_v43 = vpop.f32.mrb[10].mxu1 }
 0x3be   : > { %v2360_v44 = vpop.f32.mrb[11].mxu1  ;;  %v1108_v45 = vsel %vm912_vm4, %v1100_v41, -inf }
 0x3bf   : > { %1109 = vmax.xlane.f32.xlu0 %v1108_v45 }
 0x3c3   : > { %v1092_v46 = vpop.f32.mrb[12].mxu1 }
 0x3c4   : > { %v1101_v47 = vmul.f32 0.35355338, %v1092_v46  ;;  %v2365_v48 = vpop.f32.mrb[13].mxu1 }
 0x3c5   : > { %v1095_v49 = vpop.f32.mrb[14].mxu1 }
 0x3c6   : > { %v2366_v50 = vpop.f32.mrb[15].mxu1  ;;  %v1111_v51 = vsel %vm912_vm4, %v1101_v47, -inf }
 0x3c7   : > { %1112 = vmax.xlane.f32.xlu1 %v1111_v51 }
 0x3d5   : > { %1150 = vrot.lane.b32.xlu0 %v3235_v11, %s2807_s13 }
 0x3d8   : > { %1152 = vrot.lane.b32.xlu1 %v3241_v13, %s2807_s13 }
 0x3f8   : > { %v1104_v52 = vpop.xlane.xlu0 %1103 }
 0x3f9   : > { %v1114_v53 = vsub.f32 %v1098_v29, %v1104_v52 }
 0x3fb   : > { %v1118_v54 = vmul.f32 1.442695, %v1114_v53 }
 0x3fd   : > { %2556 = vpow2.f32 %v1118_v54 }
 0x407   : > { %v2557_v55 = vpop.eup %2556 }
 0x408   : > { %v1126_v56 = vsel %vm912_vm4, %v2557_v55, 0.0 }
 0x409   : > { %1127 = vadd.xlane.f32.xlu1 %v1126_v56 }
 0x41a   : > { %1156 = vrot.lane.b32.xlu1 %v3244_v14, %s2807_s13 }
 0x444   : > { %v1107_v57 = vpop.xlane.xlu1 %1106 }
 0x445   : > { %v1115_v58 = vsub.f32 %v1099_v35, %v1107_v57  ;;  %v1543_v57 = vlaneseq }
 0x447   : > { %v1120_v59 = vmul.f32 1.442695, %v1115_v58  ;;  %v2809_v58 = vmov 1934713408  }
 0x449   : > { %2558 = vpow2.f32 %v1120_v59  ;;  %v1573_v59 = vunpack.c.l.s4 %v2809_v58 }
 0x44c   : > { %v1110_v60 = vpop.xlane.xlu0 %1109 }
 0x44d   : > { %v1116_v61 = vsub.f32 %v1100_v41, %v1110_v60 }
 0x44f   : > { %v1122_v62 = vmul.f32 1.442695, %v1116_v61  ;;  %v1544_v61 = vshrl.u32 %v1543_v57, 7 }
 0x451   : > { %2560 = vpow2.f32 %v1122_v62 }
 0x453   : > { %v2559_v63 = vpop.eup %2558 }
 0x454   : > { %v1129_v0 = vsel %vm912_vm4, %v2559_v63, 0.0  ;;  %v1113_v5 = vpop.xlane.xlu1 %1112 }
 0x455   : > { %1130 = vadd.xlane.f32.xlu0 %v1129_v0  ;;  %v1117_v6 = vsub.f32 %v1101_v47, %v1113_v5  ;;  %v1574_v0 = vunpack.c.0.s8 %v1573_v59 }
 0x457   : > { %v1124_v7 = vmul.f32 1.442695, %v1117_v6 }
 0x458   : > { %v1153_v9 = vpop.permute.xlu1 %1152 }
 0x459   : > { %2562 = vpow2.f32 %v1124_v7 }
 0x45b   : > { %v2561_v1 = vpop.eup %2560 }
 0x45c   : > { %v1132_v3 = vsel %vm912_vm4, %v2561_v1, 0.0 }
 0x45d   : > { %1133 = vadd.xlane.f32.xlu1 %v1132_v3 }
 0x463   : > { %v2563_v8 = vpop.eup %2562 }
 0x464   : > { %v1135_v10 = vsel %vm912_vm4, %v2563_v8, 0.0 }
 0x46b   : > { %1154 = vrot.lane.b32.xlu0 %v3246_v15, %s2807_s13  ;;  %v1151_v15 = vpop.permute.xlu0 %1150 }
 0x48a   : > { %1136 = vadd.xlane.f32.xlu0 %v1135_v10  ;;  %1178 = vxpose.xlu1.c.b16.start.end [1/1] (short) (narrow) %v1153_v9, 16  ;;  %v1577_v9 = vsub.s32 %v1574_v0, %v1544_v61  ;;  %v2550_v0 = vld [vmem:[%s3188_s12] sm:$0xff]  }
 0x496   : > { %v1128_v11 = vpop.xlane.xlu1 %1127 }
 0x497   : > { %2564 = vrcp.f32 %v1128_v11 }
 0x49a   : > { %v1157_v12 = vpop.permute.xlu1 %1156 }
 0x49b   : > { %1210 = vxpose.xlu1.c.b16.start.end [1/1] (short) (narrow) %v1157_v12, 16 }
 0x4a1   : > { %v2565_v13 = vpop.eup %2564 }
 0x4a2   : > { %v1142_v14 = vmul.f32 %v2565_v13, %v2557_v55  ;;  %v2808_v55 = vmov 1983009808  }
 0x4a3   : > { %v1541_v56 = vunpack.c.l.s4 %v2808_v55 }
 0x4a4   : > { %v1146_v16 = vpack.c.bf16 %v1142_v14, %v1142_v14 }
 0x4a5   : > { %v1542_v60 = vunpack.c.0.s8 %v1541_v56 }
 0x4a6   : > { %v1230_v17 = vsel %vm912_vm4, %v1146_v16, 0 }
 0x4a7   : > { %2368 = vmatpush3.bf16.xpose.msra.mxu0 %v1230_v17 }
 0x4a8   : > { %2379 = vmatprep.subr.bf16.mxu0 %v2801_v2 }
 0x4b7   : > { %1162 = vxpose.xlu0.c.b16.start.end [1/1] (short) (narrow) %v1151_v15, 16 }
 0x4e2   : > { %v1131_v18 = vpop.xlane.xlu0 %1130 }
 0x4e3   : > { %2566 = vrcp.f32 %v1131_v18  ;;  %v2548_v18 = vld [vmem:[%s3149_s20] sm:$0xff]  }
 0x4e6   : > { %v1155_v19 = vpop.permute.xlu0 %1154 }
 0x4e7   : > { %1194 = vxpose.xlu0.c.b16.start.end [1/1] (short) (narrow) %v1155_v19, 16 }
 0x4ea   : > { %v1134_v24 = vpop.xlane.xlu1 %1133 }
 0x4eb   : > { %2568 = vrcp.f32 %v1134_v24 }
 0x4ed   : > { %v2567_v20 = vpop.eup %2566 }
 0x4ee   : > { %v1143_v21 = vmul.f32 %v2567_v20, %v2559_v63 }
 0x4f0   : > { %v1147_v22 = vpack.c.bf16 %v1143_v21, %v1143_v21  ;;  %v1186_v25 = vpop.trf.xlu1 }
 0x4f2   : > { %v1276_v23 = vsel %vm912_vm4, %v1147_v22, 0 }
 0x4f3   : > { %2374 = vmatpush3.bf16.xpose.msra.mxu1 %v1276_v23 }
 0x4f4   : > { %2385 = vmatprep.subr.bf16.mxu1 %v2801_v2 }
 0x4f5   : > { %v2569_v26 = vpop.eup %2568 }
 0x4f6   : > { %v1144_v27 = vmul.f32 %v2569_v26, %v2561_v1  ;;  %v1545_v1 = vsub.s32 %v1542_v60, %v1544_v61 }
 0x4f8   : > { %v1148_v29 = vpack.c.bf16 %v1144_v27, %v1144_v27  ;;  %v2549_v27 = vld [vmem:[%s3149_s20 + $0x8] sm:$0xff]   ;;  %s2811_s20 = smov 8  }
 0x4fa   : > { %2376 = vmatmul.mubr.msk.bf16.vlgmr.msra.gmra.mrb[16].mxu1 %vm912_vm4, %v1186_v25  ;;  %v1322_v31 = vsel %vm912_vm4, %v1148_v29, 0 }
 0x4fb   : > { %2387 = vmatprep.mubr.msk.bf16.mxu1 %vm2802_vm1, %v2801_v2 }
 0x501   : > { %v1218_v36 = vpop.trf.xlu1 }
 0x517   : > { %v1137_v28 = vpop.xlane.xlu0 %1136 }
 0x518   : > { %2570 = vrcp.f32 %v1137_v28 }
 0x51d   : > { %v1170_v30 = vpop.trf.xlu0 }
 0x51e   : > { %2370 = vmatmul.mubr.msk.bf16.vlgmr.msra.gmra.mrb[4].mxu0 %vm912_vm4, %v1170_v30 }
 0x51f   : > { %2380 = vmatpush3.bf16.xpose.msra.mxu0 %v1322_v31  ;;  %2381 = vmatprep.mubr.msk.bf16.mxu0 %vm2802_vm1, %v2801_v2 }
 0x520   : > { %2391 = vmatprep.subr.bf16.mxu0 %v2801_v2 }
 0x522   : > { %v2571_v32 = vpop.eup %2570 }
 0x523   : > { %v1145_v33 = vmul.f32 %v2571_v32, %v2563_v8 }
 0x525   : > { %v1149_v34 = vpack.c.bf16 %v1145_v33, %v1145_v33 }
 0x527   : > { %v1368_v35 = vsel %vm912_vm4, %v1149_v34, 0 }
 0x528   : > { %2386 = vmatpush3.bf16.xpose.msra.mxu1 %v1368_v35 }
 0x529   : > { %2399 = vmatprep.subr.bf16.mxu1 %v2801_v2 }
 0x52f   : > { %2388 = vmatmul.mubr.msk.bf16.vlgmr.msra.gmra.mrb[20].mxu1 %vm912_vm4, %v1218_v36 }
 0x530   : > { %2403 = vmatprep.mubr.msk.bf16.mxu1 %vm2802_vm1, %v2801_v2  ;;  %2400 = vmatpush3.bf16.msra.mxu1 %v2550_v0 }
 0x531   : > { %2401 = vmatprep.subr.bf16.mxu1 %v2801_v2 }
 0x54d   : > { %v1202_v37 = vpop.trf.xlu0 }
 0x54e   : > { %2382 = vmatmul.mubr.msk.bf16.vlgmr.msra.gmra.mrb[8].mxu0 %vm912_vm4, %v1202_v37 }
 0x54f   : > { %2395 = vmatprep.mubr.msk.bf16.mxu0 %vm2802_vm1, %v2801_v2  ;;  %2392 = vmatpush3.bf16.msra.mxu0 %v2548_v18 }
 0x550   : > { %2393 = vmatprep.subr.bf16.mxu0 %v2801_v2 }
 0x553   : > { %2394 = vmatpush3.bf16.msra.mxu0 %v2549_v27 }
 0x554   : > { %2407 = vmatprep.subr.bf16.mxu0 %v2801_v2 }
 0x5cd   : > { %v1312_v38 = vpop.f32.mrb[16].mxu1 }
 0x5ce   : > { %v2377_v39 = vpop.f32.mrb[17].mxu1  ;;  %1442 = vxpose.xlu1.b32.start.end [1/1] (short) (narrow) %v1312_v38, 8 }
 0x5cf   : > { %v1315_v40 = vpop.f32.mrb[18].mxu1 }
 0x5d0   : > { %v2378_v41 = vpop.f32.mrb[19].mxu1 }
 0x5f1   : > { %v1266_v42 = vpop.f32.mrb[4].mxu0 }
 0x5f2   : > { %v2371_v43 = vpop.f32.mrb[5].mxu0  ;;  %1410 = vxpose.xlu0.b32.start.end [1/1] (short) (narrow) %v1266_v42, 8 }
 0x5f3   : > { %v1269_v44 = vpop.f32.mrb[6].mxu0 }
 0x5f4   : > { %v2372_v45 = vpop.f32.mrb[7].mxu0 }
 0x602   : > { %v1404_v46 = vpop.f32.mrb[20].mxu1 }
 0x603   : > { %v2389_v47 = vpop.f32.mrb[21].mxu1 }
 0x604   : > { %v1407_v48 = vpop.f32.mrb[22].mxu1 }
 0x605   : > { %v2390_v49 = vpop.f32.mrb[23].mxu1 }
 0x621   : > { %v1358_v50 = vpop.f32.mrb[8].mxu0 }
 0x622   : > { %1474 = vxpose.xlu0.b32.start.end [1/1] (short) (narrow) %v1358_v50, 8  ;;  %v2383_v51 = vpop.f32.mrb[9].mxu0 }
 0x623   : > { %v1361_v52 = vpop.f32.mrb[10].mxu0  ;;  %v2276_v51 = vld [vmem:[%s3537_s23] ss:$0 sm:$0xff] }
 0x624   : > { %v2384_v53 = vpop.f32.mrb[11].mxu0 }
 0x626   : > { %1506 = vxpose.xlu0.b32.start.end [1/1] (short) (narrow) %v1404_v46, 8 }
 0x64e   : > { %v1458_v63 = vpop.trf.xlu1 }
 0x672   : > { %v1426_v54 = vpop.trf.xlu0 }
 0x6a2   : > { %v1490_v62 = vpop.trf.xlu0 }
 0x6a3   : > { %v1538_v3 = vcombine.low %v1426_v54, %v1490_v62  ;;  %v1539_v5 = vcombine.high %v1426_v54, %v1490_v62 }
 0x6a5   : > { %v1546_v10 = vrot.slane %v1538_v3, %v1545_v1  ;;  %v1553_v11 = vrot.slane %v1539_v5, %v1545_v1  ;;  %v2553_v3 = vld [vmem:[%s3206_s5 + $0x8] sm:$0xff]  }
 0x6a6   : > { %v1522_v6 = vpop.trf.xlu0 }
 0x6a7   : > { %v1554_v7 = vcombine.low %v1458_v63, %v1522_v6  ;;  %v1555_v8 = vcombine.high %v1458_v63, %v1522_v6 }
 0x6a9   : > { %v1562_v12 = vrot.slane %v1554_v7, %v1545_v1  ;;  %v1569_v13 = vrot.slane %v1555_v8, %v1545_v1 }
 0x6ab   : > { %v1570_v14 = vcombine.low %v1546_v10, %v1562_v12  ;;  %v1571_v16 = vcombine.high %v1546_v10, %v1562_v12  ;;  %v1586_v17 = vcombine.low %v1553_v11, %v1569_v13  ;;  %v1587_v15 = vcombine.high %v1553_v11, %v1569_v13  ;;  %v2281_v11 = vld [vmem:[%s3541_s26] ss:$0 sm:$0xff] }
 0x6ad   : > { %v1578_v19 = vrot.slane %v1570_v14, %v1577_v9  ;;  %v1585_v20 = vrot.slane %v1571_v16, %v1577_v9  ;;  %v1594_v21 = vrot.slane %v1586_v17, %v1577_v9  ;;  %v1601_v22 = vrot.slane %v1587_v15, %v1577_v9  ;;  %v2554_v16 = vld [vmem:[%s3206_s5 + $0x10] sm:$0xff]   ;;  %v2555_v17 = vld [vmem:[%s3206_s5 + $0x18] sm:$0xff]   ;;  %v2282_v15 = vld [vmem:[%s741_s0] ss:$0 sm:$0xff] }
 0x6af   : > { %v1606_v23 = vcombine.low %v1578_v19, %v1585_v20  ;;  %v2274_v24 = vcombine.high %v1578_v19, %v1585_v20  ;;  %v1622_v25 = vcombine.low %v1594_v21, %v1601_v22  ;;  %v2275_v26 = vcombine.high %v1594_v21, %v1601_v22 }
 0x6b1   : > { %v1613_v28 = vrot.slane %v1606_v23, %v1545_v1  ;;  %v1621_v29 = vrot.slane %v2274_v24, %v1545_v1  ;;  %v1629_v30 = vrot.slane %v1622_v25, %v1545_v1  ;;  %v1637_v31 = vrot.slane %v2275_v26, %v1545_v1  ;;  %v2551_v1 = vld [vmem:[%s3188_s12 + $0x8] sm:$0xff]  }
 0x6b2   : > { %2402 = vmatpush3.bf16.msra.mxu1 %v2551_v1 }
 0x6b3   : > { %v1639_v32 = vcombine.high %v1613_v28, %v1621_v29  ;;  %v1655_v33 = vcombine.high %v1629_v30, %v1637_v31  ;;  %v1638_v34 = vcombine.low %v1613_v28, %v1621_v29  ;;  %v1654_v35 = vcombine.low %v1629_v30, %v1637_v31 }
 0x6b5   : > { %v1653_v36 = vrot.slane %v1639_v32, %v1577_v9  ;;  %v1669_v37 = vrot.slane %v1655_v33, %v1577_v9  ;;  %v1646_v38 = vrot.slane %v1638_v34, %v1577_v9  ;;  %v1662_v39 = vrot.slane %v1654_v35, %v1577_v9  ;;  %v2280_v9 = vld [vmem:[%s3539_s7] ss:$0 sm:$0xff] }
 0x6b7   : > { %v1672_v40 = vcombine.low %v1653_v36, %v1669_v37  ;;  %v1671_v41 = vcombine.high %v1646_v38, %v1662_v39  ;;  %v1670_v42 = vcombine.low %v1646_v38, %v1662_v39  ;;  %v1673_v43 = vcombine.high %v1653_v36, %v1669_v37 }
 0x6b9   : > { %1679 = vrot.lane.b32.xlu0 %v1672_v40, %s2810_s29  ;;  %1675 = vrot.lane.b32.xlu1 %v1671_v41, %s2811_s20  ;;  %v2292_v41 = vld [vmem:[%s747_s25] ss:$0 sm:$0xff] }
 0x6bd   : > { %1683 = vrot.lane.b32.xlu1 %v1673_v43, %s2812_s17  ;;  %v2293_v43 = vld [vmem:[%s750_s6] ss:$0 sm:$0xff] }
 0x72b   : > { %v1676_v44 = vpop.permute.xlu1 %1675  ;;  %v1680_v45 = vpop.permute.xlu0 %1679 }
 0x72c   : > { %v1686_v46 = vsel %vm912_vm4, %v1670_v42, %v1676_v44 }
 0x72d   : > { %v1688_v48 = vsel %vm1687_vm5, %v1686_v46, %v1680_v45 }
 0x72f   : > { %v1684_v47 = vpop.permute.xlu1 %1683 }
 0x730   : > { %v1690_v49 = vsel %vm1689_vm6, %v1688_v48, %v1684_v47 }
 0x731   : > { %v1691_v50 = vpack.c.bf16 %v1690_v49, %v1690_v49 }
 0x733   : > { %2396 = vmatmul.mubr.msk.bf16.vlgmr.msra.gmra.mrb[12].mxu0 %vm784_vm2, %v1691_v50 }
 0x734   : > { %2415 = vmatprep.mubr.msk.bf16.mxu0 %vm2802_vm1, %v2801_v2 }
 0x806   : > { %v1752_v52 = vpop.f32.mrb[12].mxu0 }
 0x807   : > { %v1753_v53 = vadd.f32 %v2276_v51, %v1752_v52  ;;  %v2397_v54 = vpop.f32.mrb[13].mxu0 }
 0x808   : > { %v1755_v55 = vpop.f32.mrb[14].mxu0 }
 0x809   : > { %v2398_v56 = vpop.f32.mrb[15].mxu0  ;;  %v1758_v57 = vadd.f32 %v1753_v53, %v3219_v4  ;;  %v2552_v4 = vld [vmem:[%s3206_s5] sm:$0xff]  }
 0x80a   : > { %2408 = vmatpush3.bf16.msra.mxu0 %v2552_v4  ;;  %v2295_v56 = vld [vmem:[%s3546_s24] ss:$0 sm:$0xff] (!%p2294_p12) }
 0x80b   : > { %v1761_v58 = vsel %vm784_vm2, %v1758_v57, 0.0  ;;  %2409 = vmatprep.subr.bf16.mxu0 %v2801_v2 }
 0x80c   : > { %1762 = vadd.xlane.f32.xlu1 %v1761_v58  ;;  %v2296_v58 = vld [vmem:[%s3547_s16] ss:$0 sm:$0xff] (!%p2294_p12) }
 0x80e   : > { %2410 = vmatpush3.bf16.msra.mxu0 %v2553_v3 }
 0x80f   : > { %2411 = vmatprep.subr.bf16.mxu0 %v2801_v2 }
 0x812   : > { %2412 = vmatpush3.bf16.msra.mxu0 %v2554_v16 }
 0x813   : > { %2413 = vmatprep.subr.bf16.mxu0 %v2801_v2  ;;  %v2286_v2 = vld [vmem:[%s744_s19] ss:$0 sm:$0xff] }
 0x816   : > { %2414 = vmatpush3.bf16.msra.mxu0 %v2555_v17 }
 0x899   : > { %v1763_v59 = vpop.xlane.xlu1 %1762 }
 0x89a   : > { %v1765_v60 = vmul.f32 0.03125, %v1763_v59 }
 0x89c   : > { %v1766_v61 = vsub.f32 %v1758_v57, %v1765_v60 }
 0x89e   : > { %v1767_v62 = vmul.f32 %v1766_v61, %v1766_v61 }
 0x8a0   : > { %v1768_v63 = vsel %vm784_vm2, %v1767_v62, 0.0 }
 0x8a1   : > { %1769 = vadd.xlane.f32.xlu0 %v1768_v63 }
 0x92e   : > { %v1770_v5 = vpop.xlane.xlu0 %1769 }
 0x92f   : > { %v1771_v6 = vmul.f32 0.03125, %v1770_v5 }
 0x931   : > { %v1772_v7 = vadd.f32 1e-05, %v1771_v6 }
 0x933   : > { %2572 = vrsqrt.f32 %v1772_v7 }
 0x93d   : > { %v2573_v8 = vpop.eup %2572 }
 0x93e   : > { %v1774_v10 = vmul.f32 %v2573_v8, %v1766_v61 }
 0x940   : > { %v1781_v12 = vmul.f32 %v2280_v9, %v1774_v10 }
 0x942   : > { %v1788_v13 = vadd.f32 %v2281_v11, %v1781_v12 }
 0x944   : > { %v1789_v14 = vpack.c.bf16 %v1788_v13, %v1788_v13 }
 0x946   : > { %2404 = vmatmul.mubr.msk.bf16.vlgmr.msra.gmra.mrb[24].mxu1 %vm784_vm2, %v1789_v14 }
 0xa19   : > { %v1850_v18 = vpop.f32.mrb[24].mxu1 }
 0xa1a   : > { %v1851_v19 = vadd.f32 %v2282_v15, %v1850_v18  ;;  %v2405_v20 = vpop.f32.mrb[25].mxu1 }
 0xa1b   : > { %v1853_v21 = vpop.f32.mrb[26].mxu1 }
 0xa1c   : > { %v1856_v22 = vmax.f32 %v1851_v19, 0.0  ;;  %v2406_v23 = vpop.f32.mrb[27].mxu1 }
 0xa1e   : > { %v1857_v24 = vpack.c.bf16 %v1856_v22, %v1856_v22 }
 0xa20   : > { %2416 = vmatmul.mubr.msk.bf16.vlgmr.msra.gmra.mrb[16].mxu0 %vm1897_vm7, %v1857_v24 }
 0xaf3   : > { %v1935_v25 = vpop.f32.mrb[16].mxu0 }
 0xaf4   : > { %v1936_v26 = vadd.f32 %v2286_v2, %v1935_v25  ;;  %v2417_v27 = vpop.f32.mrb[17].mxu0 }
 0xaf5   : > { %v1938_v28 = vpop.f32.mrb[18].mxu0 }
 0xaf6   : > { %v2418_v29 = vpop.f32.mrb[19].mxu0  ;;  %v1941_v30 = vadd.f32 %v1936_v26, %v1788_v13 }
 0xaf8   : > { %v1944_v31 = vsel %vm784_vm2, %v1941_v30, 0.0 }
 0xaf9   : > { %1945 = vadd.xlane.f32.xlu1 %v1944_v31 }
 0xb86   : > { %v1946_v32 = vpop.xlane.xlu1 %1945 }
 0xb87   : > { %v1947_v33 = vmul.f32 0.03125, %v1946_v32 }
 0xb89   : > { %v1948_v34 = vsub.f32 %v1941_v30, %v1947_v33 }
 0xb8b   : > { %v1949_v35 = vmul.f32 %v1948_v34, %v1948_v34 }
 0xb8d   : > { %v1950_v36 = vsel %vm784_vm2, %v1949_v35, 0.0 }
 0xb8e   : > { %1951 = vadd.xlane.f32.xlu0 %v1950_v36 }
 0xc1b   : > { %v1952_v37 = vpop.xlane.xlu0 %1951 }
 0xc1c   : > { %v1953_v38 = vmul.f32 0.03125, %v1952_v37 }
 0xc1e   : > { %v1954_v39 = vadd.f32 1e-05, %v1953_v38 }
 0xc20   : > { %2574 = vrsqrt.f32 %v1954_v39 }
 0xc2a   : > { %v2575_v40 = vpop.eup %2574 }
 0xc2b   : > { %v1956_v42 = vmul.f32 %v2575_v40, %v1948_v34  ;;  %1975 = sbr.rel (%p2294_p12) target bundleno = 3435 (0xd6b), region = 100 }
 0xc2d   : > { %v1963_v44 = vmul.f32 %v2292_v41, %v1956_v42 }
 0xc2f   : > { %v1970_v45 = vadd.f32 %v2293_v43, %v1963_v44 }
 0xc31   : > { %1971 = vst.msk [vmem:[%s3208_s22] sm:$0xff] %vm784_vm2, %v1970_v45  ;;  %v1978_v46 = vsel (!%p2294_p12), %vm784_vm2, %v1970_v45, 0.0 }
 0xc32   : > { %1979 = vadd.xlane.f32.xlu0 %v1978_v46 }
 0xcbf   : > { %v1980_v47 = vpop.xlane.xlu0 %1979 }
 0xcc0   : > { %v1981_v48 = vmul.f32 0.03125, %v1980_v47 }
 0xcc2   : > { %v1982_v49 = vsub.f32 %v1970_v45, %v1981_v48 }
 0xcc4   : > { %v1983_v50 = vmul.f32 %v1982_v49, %v1982_v49 }
 0xcc6   : > { %v1984_v51 = vsel %vm784_vm2, %v1983_v50, 0.0 }
 0xcc7   : > { %1985 = vadd.xlane.f32.xlu0 %v1984_v51 }
 0xd54   : > { %v1986_v52 = vpop.xlane.xlu0 %1985 }
 0xd55   : > { %v1987_v53 = vmul.f32 0.03125, %v1986_v52 }
 0xd57   : > { %v1988_v54 = vadd.f32 1e-05, %v1987_v53 }
 0xd59   : > { %2576 = vrsqrt.f32 %v1988_v54 }
 0xd63   : > { %v2577_v55 = vpop.eup %2576 }
 0xd64   : > { %v1990_v57 = vmul.f32 %v2577_v55, %v1982_v49 }
 0xd66   : > { %v1997_v59 = vmul.f32 %v2295_v56, %v1990_v57 }
 0xd68   : > { %v2004_v60 = vadd.f32 %v2296_v58, %v1997_v59 }
 0xd6a   : > { %2005 = vst.msk [vmem:[%s3208_s22] sm:$0xff] %vm784_vm2, %v2004_v60 }
 0xd6b PF: > { %s3548_s15 = sld [smem:[#allocation17_spill]]  ;;  %s3549_s23 = sld [smem:[#allocation13_spill]] }
 0xd6c   : > { %s3550_s12 = sld [smem:[#allocation25_spill]]  ;;  %s3551_s10 = sld [smem:[#allocation40_spill]] }
 0xd6d   : > { %s2020_s14 = sshll.u32 %s3208_s22, 4  ;;  %s2813_s3 = smov [#allocation8]   ;;  %s2021_s14 = int_to_ptr.vmem [resolvable:$true] %s2020_s14 }
 0xd6e   : > { %s2668_s18 = scalar_lea.vmem %s2021_s14, 128  ;;  %s2672_s30 = sshll.u32 %s2813_s3, 4  ;;  %s2673_s30 = int_to_ptr.vmem [resolvable:$false] %s2672_s30 }
 0xd6f   : > { %p2669_p3 = scmp.ne.s32.totalorder %s2021_s14, %s2668_s18  ;;  %s2674_s8 = scalar_lea.vmem %s2673_s30, 256 }
 0xd70   : > { %p2675_p2 = scmp.lt.s32.totalorder %s2021_s14, %s2673_s30  ;;  %p2676_p13 = scmp.lt.s32.totalorder %s2674_s8, %s2668_s18 }
 0xd71   : > { %s2298_s11 = sshll.u32 %s3548_s15, 7  ;;  %s3552_s26 = sand.u32 1, %s3549_s23  }
 0xd72   : > { %s3382_s9 = scalar_lea.hbm %s3551_s10, %s2298_s11  ;;  %s2007_s27 = scalar_lea.sflag [#allocation4], %s3552_s26 }
 0xd73   : > { %p3553_p9 = scmp.ne.s32.totalorder %s3550_s12, 0  ;;  %p2677_p7 = por %p2676_p13, %p2675_p2 }
 0xd75   : > { %p2670_p0 = pnand %p2669_p3, %p3553_p9 }
 0xd77   : > { %p2671_p1 = pneg %p2670_p0 }
 0xd79   : > { %p2678_p10 = pnand %p2677_p7, %p2671_p1 }
 0xd7b   : > { %2681 = shalt.err (!%p2678_p10)
}
 0xd7c   : > { %s2682_s22 = scalar_lea.hbm %s3382_s9, 128  ;;  %s2686_s5 = scalar_lea.hbm %s3551_s10, 256 }
 0xd7d   : > { %p2683_p6 = scmp.ne.s32.totalorder %s3382_s9, %s2682_s22  ;;  %p2687_p11 = scmp.lt.u32.totalorder %s3382_s9, %s3551_s10 }
 0xd7e   : > { %p2688_p8 = scmp.lt.u32.totalorder %s2686_s5, %s2682_s22  ;;  %p2690_p3 = scmp.lt.u32.totalorder %s2682_s22, %s3382_s9 }
 0xd7f   : > { %p2684_p5 = pnand %p2683_p6, %p3553_p9 }
 0xd80   : > { %p2689_p12 = por %p2688_p8, %p2687_p11 }
 0xd81   : > { %p2685_p4 = pneg %p2684_p5 }
 0xd82   : > { %p2691_p0 = por %p2690_p3, %p2689_p12 }
 0xd84   : > { %p2692_p1 = pnand %p2691_p0, %p2685_p4 }
 0xd86   : > { %2695 = shalt.err (!%p2692_p1)
}
 0xd87   : > { %2425 = dma.vmem_to_hbm [thread:$0]  (%p3553_p9), %s2021_s14, 128, %s3382_s9, %s2007_s27  }
 0xd88 PF: > { %s3554_s29 = sld [smem:[#allocation20_spill]]  ;;  %s3555_s20 = sld [smem:[#allocation12_spill]] }
 0xd89   : > { %s3556_s6 = sld [smem:[#allocation26_spill]] }
 0xd8e   : > { %p2442_p2 = scmp.ge.s32.totalorder %s3554_s29, 2  ;;  %s2032_s25 = sand.u32 1, %s3555_s20  }
 0xd8f   : > { %p3557_p13 = scmp.ne.s32.totalorder %s3556_s6, 0  ;;  %s2033_s24 = scalar_lea.sflag [#allocation4], %s2032_s25 }
 0xd91   : > { %p2438_p7 = pnand %p2442_p2, %p3557_p13 }
 0xd93   : > { %2749 = dma.done.wait (!%p2438_p7), %s2033_s24, 128  }
 0xd94   : > { %2751 = vsyncadd (!%p2438_p7), %s2033_s24, 4294967168  ;;  %s34_s28 = sadd.s32 1, %s3554_s29   ;;  %s3558_s18 = sld [smem:[#allocation13_spill]] }
 0xd95   : > { %p31_p10 = scmp.ge.s32.totalorder %s34_s28, 6   ;;  %s3559_s19 = sld [smem:[#allocation14_spill]] }
 0xd96   : > { %s3560_s20 = sld [smem:[#allocation24_spill]]  ;;  %s3561_s21 = sld [smem:[#allocation15_spill]] }
 0xd97   : > { %s3562_s22 = sld [smem:[#allocation16_spill]]  ;;  %s3563_s23 = sld [smem:[#allocation23_spill]] }
 0xd98   : > { %s3564_s24 = sld [smem:[#allocation18_spill]]  ;;  %s3565_s25 = sld [smem:[#allocation19_spill]] }
 0xd99   : > { %s3566_s26 = sld [smem:[#allocation21_spill]]  ;;  %s3567_s27 = sld [smem:[#allocation22_spill]] }
 0xd9a   :  { %33 = sbr.rel (!%p31_p10) target bundleno = 26 (0x1a), region = 187 }
 0xda1   :  { %2038 = vsyncpa [#allocation3], 1 }
 0xda2   :  { %2040 = vsyncpa [#allocation3 + $0x1], 1 }
 0xda3   :  { %2041 = vsyncpa [#allocation6], 1 }
 0xda4   :  { %2043 = vsyncpa [#allocation6 + $0x1], 1 }
 0xda5   :  { %2044 = vsyncpa [#allocation4], 1 }
 0xda6   :  { %2046 = vsyncpa [#allocation4 + $0x1], 1 }

</bundles_post_ra>
